<compile_context>
chip_gen: v5e
topology: v5e:2x2
jax: 0.10.0
libtpu: 0.0.40
codegen_flags: <defaults>
</compile_context>

<pallas_src>
import jax
import jax.numpy as jnp
from jax.experimental import pallas as pl
from jax.experimental.pallas import tpu as pltpu

# ----------------------- small, ViT-consistent config -----------------------
BATCH = 2
IN_CHANS = 3
IMG = 32                              # image_size
PATCH = 16                            # patch_size
GRID_HW = IMG // PATCH
N_PATCH = GRID_HW * GRID_HW           # num_tokens per image (4)
SEQ = N_PATCH + 1                     # +1 cls token (5)
SEQ_PAD = 8                           # per-batch padded seq (sublane aligned)
TOK = BATCH * SEQ_PAD                 # folded token count (16)
EMBED = 128                           # embed_dim
NUM_HEADS = 4
HEAD_DIM = EMBED // NUM_HEADS         # 32
NUM_LAYERS = 2
MLP_DIM = int(EMBED * 4.0)            # mlp_ratio = 4.0
CPP = IN_CHANS * PATCH * PATCH        # flattened patch length (768)
EPS = 1e-5                            # nn.LayerNorm default eps
NEG_INF = -1e30                       # additive mask value


# ------------------------------ Pallas kernel -------------------------------
def encoder_kernel(patches_ref, wpe_ref, tokbias_ref, mask_ref, hmask_ref,
                   ln1g_ref, ln1b_ref, wqkv_ref, bqkv_ref,
                   wproj_ref, bproj_ref, ln2g_ref, ln2b_ref,
                   w1_ref, b1_ref, w2_ref, b2_ref,
                   lnfg_ref, lnfb_ref, out_ref, x_sc):
    """One transformer block per grid step; token state carried in x_sc."""
    l = pl.program_id(0)

    def layer_norm(y, g, b):
        mu = jnp.mean(y, axis=-1, keepdims=True)
        var = jnp.mean(jnp.square(y - mu), axis=-1, keepdims=True)
        return (y - mu) * jax.lax.rsqrt(var + EPS) * g + b

    def mm(a, w_bf16):
        # bf16 MXU operands, f32 accumulation.
        return jnp.dot(a.astype(jnp.bfloat16), w_bf16,
                       preferred_element_type=jnp.float32)

    # ---- PatchEmbed (stride-P conv == matmul), fused token assembly ----
    # patches rows are pre-placed in the padded per-batch layout; tokbias
    # carries cls+pos[0], conv-bias+pos[1:], zeros on pad rows. pos_drop p=0.
    @pl.when(l == 0)
    def _():
        x_sc[...] = mm(patches_ref[...], wpe_ref[...]) + tokbias_ref[...]

    x = x_sc[...]                                             # (TOK, D) f32
    tok = x.shape[0]

    # ---- attention (pre-norm, qkv_bias=True, softmax scale folded in W) ----
    h = layer_norm(x, ln1g_ref[0], ln1b_ref[0])
    qkv = mm(h, wqkv_ref[0]) + bqkv_ref[0]                    # (TOK, 3D)
    q = qkv[:, 0:EMBED]                                       # already scaled
    k = qkv[:, EMBED:2 * EMBED].astype(jnp.bfloat16)
    v = qkv[:, 2 * EMBED:3 * EMBED].astype(jnp.bfloat16)

    # Pack heads along sublanes: row (hh*TOK + t) only keeps head hh's
    # columns of q, so one matmul computes all per-head score matrices.
    hmask = hmask_ref[...]                                    # (H*TOK, D) 0/1
    q_big = (jnp.tile(q, (NUM_HEADS, 1)) * hmask).astype(jnp.bfloat16)
    s = jax.lax.dot_general(q_big, k, (((1,), (1,)), ((), ())),
                            preferred_element_type=jnp.float32)  # (H*TOK, TOK)
    # Block-diagonal batch mask (also hides padded key tokens), per head.
    s = s + mask_ref[...]
    s = s - jnp.max(s, axis=-1, keepdims=True)
    e = jnp.exp(s)
    inv = pl.reciprocal(jnp.sum(e, axis=-1, keepdims=True), approx=True)
    a = (e * inv).astype(jnp.bfloat16)
    o_big = jnp.dot(a, v, preferred_element_type=jnp.float32) * hmask
    # Recombine heads: tile-aligned sublane slices + adds (columns disjoint).
    attn = o_big[0:tok, :]
    for hh in range(1, NUM_HEADS):
        attn = attn + o_big[hh * tok:(hh + 1) * tok, :]       # (TOK, D)

    x = x + mm(attn, wproj_ref[0]) + bproj_ref[0]

    # ---- MLP (exact erf GELU, matching nn.GELU default) ----
    h2 = layer_norm(x, ln2g_ref[0], ln2b_ref[0])
    m = mm(h2, w1_ref[0]) + b1_ref[0]
    m = 0.5 * m * (1.0 + jax.lax.erf(m * 0.7071067811865476))
    x = x + mm(m, w2_ref[0]) + b2_ref[0]

    x_sc[...] = x

    # ---- final LayerNorm + single unmasked (TOK, D) store ----
    @pl.when(l == pl.num_programs(0) - 1)
    def _():
        out_ref[...] = layer_norm(x, lnfg_ref[...], lnfb_ref[...])


# ------------------------------ JAX wrapper ---------------------------------
def extract_patches(x_nchw):
    """(B, C, H, W) NCHW -> (B, N, C*P*P) with (C, ph, pw) flatten order,
    matching a PyTorch Conv2d(kernel=P, stride=P) weight of shape (D,C,P,P)."""
    b, c, h, w = x_nchw.shape
    gh, gw = h // PATCH, w // PATCH
    x = x_nchw.reshape(b, c, gh, PATCH, gw, PATCH)
    x = x.transpose(0, 2, 4, 1, 3, 5)            # (B, gh, gw, C, P, P)
    return x.reshape(b, gh * gw, c * PATCH * PATCH)


@jax.jit
def vit_encoder(x_img, params):
    b = x_img.shape[0]
    tok = b * SEQ_PAD
    scale = 1.0 / (HEAD_DIM ** 0.5)
    bf16 = jnp.bfloat16

    # ---- layout plumbing (wrapper-side, param/shape only) ----
    # 1) patches placed into the padded per-batch token layout.
    patches = extract_patches(x_img)                               # (B, N, CPP)
    patches_pad = jnp.zeros((b, SEQ_PAD, CPP), jnp.float32)
    patches_pad = patches_pad.at[:, 1:1 + N_PATCH, :].set(patches)
    patches_pad = patches_pad.reshape(tok, CPP).astype(bf16)

    # 2) additive token bias: cls+pos[0] on the cls row, conv-bias+pos on
    #    patch rows, zeros on pad rows; tiled across the folded batch.
    tb = jnp.zeros((SEQ_PAD, EMBED), jnp.float32)
    tb = tb.at[0].set(params["cls"][0] + params["pos"][0])
    tb = tb.at[1:SEQ].set(params["bpe"][0] + params["pos"][1:SEQ])
    tokbias = jnp.tile(tb, (b, 1))                                 # (TOK, D)

    # 3) block-diagonal attention mask (also masks padded key tokens),
    #    tiled per head along sublanes.
    ri = jnp.arange(tok)
    same_batch = (ri[:, None] // SEQ_PAD) == (ri[None, :] // SEQ_PAD)
    valid_key = (ri[None, :] % SEQ_PAD) < SEQ
    attn_mask = jnp.where(same_batch & valid_key, 0.0, NEG_INF).astype(jnp.float32)
    mask_big = jnp.tile(attn_mask, (NUM_HEADS, 1))                 # (H*TOK, TOK)

    # 4) head-column selection mask for the packed-heads attention.
    di = jnp.arange(EMBED)
    hrow = jnp.repeat(jnp.arange(NUM_HEADS), tok)                  # (H*TOK,)
    hmask = ((di[None, :] // HEAD_DIM) == hrow[:, None]).astype(jnp.float32)

    # 5) fold softmax scale into the Q columns of wqkv / bqkv.
    wqkv = params["wqkv"].at[:, :, :EMBED].multiply(scale).astype(bf16)
    bqkv = params["bqkv"].at[:, :, :EMBED].multiply(scale)

    const_in = [patches_pad, params["wpe"].astype(bf16), tokbias, mask_big, hmask]
    layer_in = [params["ln1g"], params["ln1b"], wqkv, bqkv,
                params["wproj"].astype(bf16), params["bproj"],
                params["ln2g"], params["ln2b"],
                params["w1"].astype(bf16), params["b1"],
                params["w2"].astype(bf16), params["b2"]]
    final_in = [params["lnfg"], params["lnfb"]]

    def const_spec(a):
        return pl.BlockSpec(a.shape, lambda l, z=(0,) * a.ndim: z)

    def layer_spec(a):
        return pl.BlockSpec((1,) + a.shape[1:],
                            lambda l, z=(0,) * (a.ndim - 1): (l,) + z)

    in_specs = ([const_spec(a) for a in const_in]
                + [layer_spec(a) for a in layer_in]
                + [const_spec(a) for a in final_in])

    out_pad = pl.pallas_call(
        encoder_kernel,
        out_shape=jax.ShapeDtypeStruct((tok, EMBED), jnp.float32),
        grid_spec=pltpu.PrefetchScalarGridSpec(
            num_scalar_prefetch=0,
            grid=(NUM_LAYERS,),
            in_specs=in_specs,
            out_specs=pl.BlockSpec((tok, EMBED), lambda l: (0, 0)),
            scratch_shapes=[pltpu.VMEM((tok, EMBED), jnp.float32)]),
        compiler_params=pltpu.CompilerParams(
            dimension_semantics=("arbitrary",)),
    )(*const_in, *layer_in, *final_in)

    # strip pad rows (trivial XLA slice); lane-dense unmasked store in-kernel.
    return out_pad.reshape(b, SEQ_PAD, EMBED)[:, :SEQ, :]


# ------------------------- deterministic parameters -------------------------
def init_params(key):
    ks = jax.random.split(key, 16)
    std = 0.02

    def nrm(k, shape):
        return jax.random.normal(k, shape, dtype=jnp.float32) * std

    L, D, DH = NUM_LAYERS, EMBED, MLP_DIM
    return {
        "wpe":   nrm(ks[0], (CPP, D)),        # conv weight (D,C,P,P) -> (CPP, D)
        "bpe":   nrm(ks[1], (1, D)),
        "cls":   nrm(ks[2], (1, D)),
        "pos":   nrm(ks[3], (SEQ, D)),
        "ln1g":  jnp.ones((L, 1, D), jnp.float32),
        "ln1b":  jnp.zeros((L, 1, D), jnp.float32),
        "wqkv":  nrm(ks[4], (L, D, 3 * D)),
        "bqkv":  nrm(ks[5], (L, 1, 3 * D)),
        "wproj": nrm(ks[6], (L, D, D)),
        "bproj": nrm(ks[7], (L, 1, D)),
        "ln2g":  jnp.ones((L, 1, D), jnp.float32),
        "ln2b":  jnp.zeros((L, 1, D), jnp.float32),
        "w1":    nrm(ks[8], (L, D, DH)),
        "b1":    nrm(ks[9], (L, 1, DH)),
        "w2":    nrm(ks[10], (L, DH, D)),
        "b2":    nrm(ks[11], (L, 1, D)),
        "lnfg":  jnp.ones((1, D), jnp.float32),
        "lnfb":  jnp.zeros((1, D), jnp.float32),
    }


# ----------------------------- pure-JAX reference ---------------------------
def reference(x_img, p):
    b = x_img.shape[0]
    patches = extract_patches(x_img)
    x = patches @ p["wpe"] + p["bpe"]                       # (B, N, D)
    cls = jnp.broadcast_to(p["cls"][None], (b, 1, EMBED))
    x = jnp.concatenate([cls, x], axis=1) + p["pos"][None]  # (B, S, D)

    def ln(y, g, bta):
        mu = jnp.mean(y, axis=-1, keepdims=True)
        var = jnp.mean(jnp.square(y - mu), axis=-1, keepdims=True)
        return (y - mu) * jax.lax.rsqrt(var + EPS) * g + bta

    scale = 1.0 / (HEAD_DIM ** 0.5)
    for l in range(NUM_LAYERS):
        h = ln(x, p["ln1g"][l], p["ln1b"][l])
        qkv = h @ p["wqkv"][l] + p["bqkv"][l]
        q, k, v = (qkv[..., :EMBED], qkv[..., EMBED:2 * EMBED],
                   qkv[..., 2 * EMBED:])
        q = q.reshape(b, SEQ, NUM_HEADS, HEAD_DIM).transpose(0, 2, 1, 3) * scale
        k = k.reshape(b, SEQ, NUM_HEADS, HEAD_DIM).transpose(0, 2, 1, 3)
        v = v.reshape(b, SEQ, NUM_HEADS, HEAD_DIM).transpose(0, 2, 1, 3)
        s = q @ k.transpose(0, 1, 3, 2)
        a = jax.nn.softmax(s, axis=-1)
        o = (a @ v).transpose(0, 2, 1, 3).reshape(b, SEQ, EMBED)
        x = x + (o @ p["wproj"][l] + p["bproj"][l])
        h2 = ln(x, p["ln2g"][l], p["ln2b"][l])
        m = jax.nn.gelu(h2 @ p["w1"][l] + p["b1"][l], approximate=False)
        x = x + (m @ p["w2"][l] + p["b2"][l])
    return ln(x, p["lnfg"], p["lnfb"])


# ----------------------------------- main ------------------------------------
if __name__ == "__main__":
    key = jax.random.PRNGKey(0)
    k_x, k_p = jax.random.split(key)
    x_img = jax.random.normal(k_x, (BATCH, IN_CHANS, IMG, IMG), jnp.float32)
    params = init_params(k_p)

    out = vit_encoder(x_img, params)
    out = jax.block_until_ready(out)

    ref = reference(x_img, params)
    assert out.shape == (BATCH, SEQ, EMBED), out.shape
    # bf16 matmul operands (f32 accumulation) + approx softmax reciprocal in
    # the kernel vs a pure-f32 reference -> mixed-precision tolerance.
    max_err = float(jnp.max(jnp.abs(out - ref)))
    assert jnp.allclose(out, ref, atol=3e-2, rtol=3e-2), max_err

    print("KERNEL_OK")
</pallas_src>

<mosaic_0001>
module attributes {stable_mosaic.version = 11 : i64} {
  func.func @encoder_kernel(%arg0: i32, %arg1: memref<16x768xbf16, #tpu.memory_space<vmem>>, %arg2: memref<768x128xbf16, #tpu.memory_space<vmem>>, %arg3: memref<16x128xf32, #tpu.memory_space<vmem>>, %arg4: memref<64x16xf32, #tpu.memory_space<vmem>>, %arg5: memref<64x128xf32, #tpu.memory_space<vmem>>, %arg6: memref<1x1x128xf32, #tpu.memory_space<vmem>>, %arg7: memref<1x1x128xf32, #tpu.memory_space<vmem>>, %arg8: memref<1x128x384xbf16, #tpu.memory_space<vmem>>, %arg9: memref<1x1x384xf32, #tpu.memory_space<vmem>>, %arg10: memref<1x128x128xbf16, #tpu.memory_space<vmem>>, %arg11: memref<1x1x128xf32, #tpu.memory_space<vmem>>, %arg12: memref<1x1x128xf32, #tpu.memory_space<vmem>>, %arg13: memref<1x1x128xf32, #tpu.memory_space<vmem>>, %arg14: memref<1x128x512xbf16, #tpu.memory_space<vmem>>, %arg15: memref<1x1x512xf32, #tpu.memory_space<vmem>>, %arg16: memref<1x512x128xbf16, #tpu.memory_space<vmem>>, %arg17: memref<1x1x128xf32, #tpu.memory_space<vmem>>, %arg18: memref<1x128xf32, #tpu.memory_space<vmem>>, %arg19: memref<1x128xf32, #tpu.memory_space<vmem>>, %arg20: memref<16x128xf32, #tpu.memory_space<vmem>>, %arg21: memref<16x128xf32, #tpu.memory_space<vmem>>) attributes {dimension_semantics = [#tpu.dimension_semantics<arbitrary>], iteration_bounds = array<i64: 2>, scalar_prefetch = 0 : i64, scratch_operands = 1 : i64, tpu.core_type = #tpu.core_type<tc>, window_params = [{pipeline_mode = #tpu.pipeline_mode<synchronous>, transform_indices = @transform_0, window_bounds = array<i64: 16, 768>}, {pipeline_mode = #tpu.pipeline_mode<synchronous>, transform_indices = @transform_1, window_bounds = array<i64: 768, 128>}, {pipeline_mode = #tpu.pipeline_mode<synchronous>, transform_indices = @transform_2, window_bounds = array<i64: 16, 128>}, {pipeline_mode = #tpu.pipeline_mode<synchronous>, transform_indices = @transform_3, window_bounds = array<i64: 64, 16>}, {pipeline_mode = #tpu.pipeline_mode<synchronous>, transform_indices = @transform_4, window_bounds = array<i64: 64, 128>}, {transform_indices = @transform_5, window_bounds = array<i64: 1, 1, 128>}, {transform_indices = @transform_6, window_bounds = array<i64: 1, 1, 128>}, {transform_indices = @transform_7, window_bounds = array<i64: 1, 128, 384>}, {transform_indices = @transform_8, window_bounds = array<i64: 1, 1, 384>}, {transform_indices = @transform_9, window_bounds = array<i64: 1, 128, 128>}, {transform_indices = @transform_10, window_bounds = array<i64: 1, 1, 128>}, {transform_indices = @transform_11, window_bounds = array<i64: 1, 1, 128>}, {transform_indices = @transform_12, window_bounds = array<i64: 1, 1, 128>}, {transform_indices = @transform_13, window_bounds = array<i64: 1, 128, 512>}, {transform_indices = @transform_14, window_bounds = array<i64: 1, 1, 512>}, {transform_indices = @transform_15, window_bounds = array<i64: 1, 512, 128>}, {transform_indices = @transform_16, window_bounds = array<i64: 1, 1, 128>}, {pipeline_mode = #tpu.pipeline_mode<synchronous>, transform_indices = @transform_17, window_bounds = array<i64: 1, 128>}, {pipeline_mode = #tpu.pipeline_mode<synchronous>, transform_indices = @transform_18, window_bounds = array<i64: 1, 128>}, {pipeline_mode = #tpu.pipeline_mode<synchronous>, transform_indices = @transform_19, window_bounds = array<i64: 16, 128>}]} {
    %c0_i32 = arith.constant 0 : i32
    %0 = arith.cmpi eq, %arg0, %c0_i32 : i32
    %1 = arith.extui %0 : i1 to i32
    %c0_i32_0 = arith.constant 0 : i32
    %2 = arith.cmpi ne, %1, %c0_i32_0 : i32
    scf.if %2 {
      %c0_65 = arith.constant 0 : index
      %c0_66 = arith.constant 0 : index
      %134 = vector.load %arg1[%c0_65, %c0_66] : memref<16x768xbf16, #tpu.memory_space<vmem>>, vector<16x768xbf16>
      %c0_67 = arith.constant 0 : index
      %c0_68 = arith.constant 0 : index
      %135 = vector.load %arg2[%c0_67, %c0_68] : memref<768x128xbf16, #tpu.memory_space<vmem>>, vector<768x128xbf16>
      %cst_69 = arith.constant dense<0.000000e+00> : vector<16x128xf32>
      %136 = tpu.matmul %134, %135, %cst_69 {dimension_numbers = #tpu.dot_dimension_numbers<[1], [0], [0], [1], [0, 0, 1, 1], [], []>} : vector<16x768xbf16>, vector<768x128xbf16>, vector<16x128xf32> -> vector<16x128xf32>
      %c0_70 = arith.constant 0 : index
      %c0_71 = arith.constant 0 : index
      %137 = vector.load %arg3[%c0_70, %c0_71] : memref<16x128xf32, #tpu.memory_space<vmem>>, vector<16x128xf32>
      %138 = arith.addf %136, %137 : vector<16x128xf32>
      %c0_72 = arith.constant 0 : index
      %c0_73 = arith.constant 0 : index
      %139 = vector.load %arg21[%c0_72, %c0_73] : memref<16x128xf32, #tpu.memory_space<vmem>>, vector<16x128xf32>
      tpu.vector_store %arg21[%c0_72, %c0_73], %138 {strides = array<i32>} : memref<16x128xf32, #tpu.memory_space<vmem>>, vector<16x128xf32>,
    } else {
    }
    %c0 = arith.constant 0 : index
    %c0_1 = arith.constant 0 : index
    %3 = vector.load %arg21[%c0, %c0_1] : memref<16x128xf32, #tpu.memory_space<vmem>>, vector<16x128xf32>
    %c0_2 = arith.constant 0 : index
    %c0_3 = arith.constant 0 : index
    %c0_4 = arith.constant 0 : index
    %4 = vector.load %arg6[%c0_2, %c0_3, %c0_4] : memref<1x1x128xf32, #tpu.memory_space<vmem>>, vector<1x1x128xf32>
    %5 = vector.shape_cast %4 : vector<1x1x128xf32> to vector<1x128xf32>
    %c0_5 = arith.constant 0 : index
    %c0_6 = arith.constant 0 : index
    %c0_7 = arith.constant 0 : index
    %6 = vector.load %arg7[%c0_5, %c0_6, %c0_7] : memref<1x1x128xf32, #tpu.memory_space<vmem>>, vector<1x1x128xf32>
    %7 = vector.shape_cast %6 : vector<1x1x128xf32> to vector<1x128xf32>
    %cst = arith.constant dense<0.000000e+00> : vector<16xf32>
    %8 = vector.multi_reduction <add>, %3, %cst [1] : vector<16x128xf32> to vector<16xf32>
    %9 = vector.shape_cast %8 : vector<16xf32> to vector<16x1xf32>
    %cst_8 = arith.constant 1.280000e+02 : f32
    %10 = vector.broadcast %cst_8 : f32 to vector<16x1xf32>
    %11 = arith.divf %9, %10 : vector<16x1xf32>
    %12 = vector.broadcast %11 : vector<16x1xf32> to vector<16x128xf32>
    %13 = arith.subf %3, %12 : vector<16x128xf32>
    %14 = arith.mulf %13, %13 : vector<16x128xf32>
    %cst_9 = arith.constant dense<0.000000e+00> : vector<16xf32>
    %15 = vector.multi_reduction <add>, %14, %cst_9 [1] : vector<16x128xf32> to vector<16xf32>
    %16 = vector.shape_cast %15 : vector<16xf32> to vector<16x1xf32>
    %cst_10 = arith.constant 1.280000e+02 : f32
    %17 = vector.broadcast %cst_10 : f32 to vector<16x1xf32>
    %18 = arith.divf %16, %17 : vector<16x1xf32>
    %19 = vector.broadcast %11 : vector<16x1xf32> to vector<16x128xf32>
    %20 = arith.subf %3, %19 : vector<16x128xf32>
    %cst_11 = arith.constant 9.99999974E-6 : f32
    %21 = vector.broadcast %cst_11 : f32 to vector<16x1xf32>
    %22 = arith.addf %18, %21 : vector<16x1xf32>
    %23 = math.rsqrt %22 : vector<16x1xf32>
    %24 = vector.broadcast %23 : vector<16x1xf32> to vector<16x128xf32>
    %25 = arith.mulf %20, %24 : vector<16x128xf32>
    %26 = vector.broadcast %5 : vector<1x128xf32> to vector<16x128xf32>
    %27 = arith.mulf %25, %26 : vector<16x128xf32>
    %28 = vector.broadcast %7 : vector<1x128xf32> to vector<16x128xf32>
    %29 = arith.addf %27, %28 : vector<16x128xf32>
    %c0_12 = arith.constant 0 : index
    %c0_13 = arith.constant 0 : index
    %c0_14 = arith.constant 0 : index
    %30 = vector.load %arg8[%c0_12, %c0_13, %c0_14] : memref<1x128x384xbf16, #tpu.memory_space<vmem>>, vector<1x128x384xbf16>
    %31 = vector.shape_cast %30 : vector<1x128x384xbf16> to vector<128x384xbf16>
    %32 = arith.truncf %29 : vector<16x128xf32> to vector<16x128xbf16>
    %cst_15 = arith.constant dense<0.000000e+00> : vector<16x384xf32>
    %33 = tpu.matmul %32, %31, %cst_15 {dimension_numbers = #tpu.dot_dimension_numbers<[1], [0], [0], [1], [0, 0, 1, 1], [], []>} : vector<16x128xbf16>, vector<128x384xbf16>, vector<16x384xf32> -> vector<16x384xf32>
    %c0_16 = arith.constant 0 : index
    %c0_17 = arith.constant 0 : index
    %c0_18 = arith.constant 0 : index
    %34 = vector.load %arg9[%c0_16, %c0_17, %c0_18] : memref<1x1x384xf32, #tpu.memory_space<vmem>>, vector<1x1x384xf32>
    %35 = vector.shape_cast %34 : vector<1x1x384xf32> to vector<1x384xf32>
    %36 = vector.broadcast %35 : vector<1x384xf32> to vector<16x384xf32>
    %37 = arith.addf %33, %36 : vector<16x384xf32>
    %38 = vector.extract_strided_slice %37 {offsets = [0, 0], sizes = [16, 128], strides = [1, 1]} : vector<16x384xf32> to vector<16x128xf32>
    %39 = vector.extract_strided_slice %37 {offsets = [0, 128], sizes = [16, 128], strides = [1, 1]} : vector<16x384xf32> to vector<16x128xf32>
    %40 = arith.truncf %39 : vector<16x128xf32> to vector<16x128xbf16>
    %41 = vector.extract_strided_slice %37 {offsets = [0, 256], sizes = [16, 128], strides = [1, 1]} : vector<16x384xf32> to vector<16x128xf32>
    %42 = arith.truncf %41 : vector<16x128xf32> to vector<16x128xbf16>
    %c0_19 = arith.constant 0 : index
    %c0_20 = arith.constant 0 : index
    %43 = vector.load %arg5[%c0_19, %c0_20] : memref<64x128xf32, #tpu.memory_space<vmem>>, vector<64x128xf32>
    %44 = tpu.concatenate %38, %38, %38, %38 in 0 : vector<16x128xf32>, vector<16x128xf32>, vector<16x128xf32>, vector<16x128xf32> -> vector<64x128xf32>
    %45 = arith.mulf %44, %43 : vector<64x128xf32>
    %46 = arith.truncf %45 : vector<64x128xf32> to vector<64x128xbf16>
    %cst_21 = arith.constant dense<0.000000e+00> : vector<64x16xf32>
    %47 = tpu.matmul %46, %40, %cst_21 {dimension_numbers = #tpu.dot_dimension_numbers<[1], [1], [0], [0], [0, 0, 1, 0], [], []>} : vector<64x128xbf16>, vector<16x128xbf16>, vector<64x16xf32> -> vector<64x16xf32>
    %c0_22 = arith.constant 0 : index
    %c0_23 = arith.constant 0 : index
    %48 = vector.load %arg4[%c0_22, %c0_23] : memref<64x16xf32, #tpu.memory_space<vmem>>, vector<64x16xf32>
    %49 = arith.addf %47, %48 : vector<64x16xf32>
    %cst_24 = arith.constant dense<0xFF800000> : vector<64xf32>
    %50 = vector.multi_reduction <maximumf>, %49, %cst_24 [1] : vector<64x16xf32> to vector<64xf32>
    %51 = vector.shape_cast %50 : vector<64xf32> to vector<64x1xf32>
    %52 = vector.broadcast %51 : vector<64x1xf32> to vector<64x16xf32>
    %53 = arith.subf %49, %52 : vector<64x16xf32>
    %54 = math.exp %53 : vector<64x16xf32>
    %cst_25 = arith.constant dense<0.000000e+00> : vector<64xf32>
    %55 = vector.multi_reduction <add>, %54, %cst_25 [1] : vector<64x16xf32> to vector<64xf32>
    %56 = vector.shape_cast %55 : vector<64xf32> to vector<64x1xf32>
    %57 = tpu.reciprocal %56 {approx = true} : vector<64x1xf32> -> vector<64x1xf32>
    %58 = vector.broadcast %57 : vector<64x1xf32> to vector<64x16xf32>
    %59 = arith.mulf %54, %58 : vector<64x16xf32>
    %60 = arith.truncf %59 : vector<64x16xf32> to vector<64x16xbf16>
    %cst_26 = arith.constant dense<0.000000e+00> : vector<64x128xf32>
    %61 = tpu.matmul %60, %42, %cst_26 {dimension_numbers = #tpu.dot_dimension_numbers<[1], [0], [0], [1], [0, 0, 1, 1], [], []>} : vector<64x16xbf16>, vector<16x128xbf16>, vector<64x128xf32> -> vector<64x128xf32>
    %62 = arith.mulf %61, %43 : vector<64x128xf32>
    %63 = vector.extract_strided_slice %62 {offsets = [0, 0], sizes = [16, 128], strides = [1, 1]} : vector<64x128xf32> to vector<16x128xf32>
    %64 = vector.extract_strided_slice %62 {offsets = [16, 0], sizes = [16, 128], strides = [1, 1]} : vector<64x128xf32> to vector<16x128xf32>
    %65 = arith.addf %63, %64 : vector<16x128xf32>
    %66 = vector.extract_strided_slice %62 {offsets = [32, 0], sizes = [16, 128], strides = [1, 1]} : vector<64x128xf32> to vector<16x128xf32>
    %67 = arith.addf %65, %66 : vector<16x128xf32>
    %68 = vector.extract_strided_slice %62 {offsets = [48, 0], sizes = [16, 128], strides = [1, 1]} : vector<64x128xf32> to vector<16x128xf32>
    %69 = arith.addf %67, %68 : vector<16x128xf32>
    %c0_27 = arith.constant 0 : index
    %c0_28 = arith.constant 0 : index
    %c0_29 = arith.constant 0 : index
    %70 = vector.load %arg10[%c0_27, %c0_28, %c0_29] : memref<1x128x128xbf16, #tpu.memory_space<vmem>>, vector<1x128x128xbf16>
    %71 = vector.shape_cast %70 : vector<1x128x128xbf16> to vector<128x128xbf16>
    %72 = arith.truncf %69 : vector<16x128xf32> to vector<16x128xbf16>
    %cst_30 = arith.constant dense<0.000000e+00> : vector<16x128xf32>
    %73 = tpu.matmul %72, %71, %cst_30 {dimension_numbers = #tpu.dot_dimension_numbers<[1], [0], [0], [1], [0, 0, 1, 1], [], []>} : vector<16x128xbf16>, vector<128x128xbf16>, vector<16x128xf32> -> vector<16x128xf32>
    %74 = arith.addf %3, %73 : vector<16x128xf32>
    %c0_31 = arith.constant 0 : index
    %c0_32 = arith.constant 0 : index
    %c0_33 = arith.constant 0 : index
    %75 = vector.load %arg11[%c0_31, %c0_32, %c0_33] : memref<1x1x128xf32, #tpu.memory_space<vmem>>, vector<1x1x128xf32>
    %76 = vector.shape_cast %75 : vector<1x1x128xf32> to vector<1x128xf32>
    %77 = vector.broadcast %76 : vector<1x128xf32> to vector<16x128xf32>
    %78 = arith.addf %74, %77 : vector<16x128xf32>
    %c0_34 = arith.constant 0 : index
    %c0_35 = arith.constant 0 : index
    %c0_36 = arith.constant 0 : index
    %79 = vector.load %arg12[%c0_34, %c0_35, %c0_36] : memref<1x1x128xf32, #tpu.memory_space<vmem>>, vector<1x1x128xf32>
    %80 = vector.shape_cast %79 : vector<1x1x128xf32> to vector<1x128xf32>
    %c0_37 = arith.constant 0 : index
    %c0_38 = arith.constant 0 : index
    %c0_39 = arith.constant 0 : index
    %81 = vector.load %arg13[%c0_37, %c0_38, %c0_39] : memref<1x1x128xf32, #tpu.memory_space<vmem>>, vector<1x1x128xf32>
    %82 = vector.shape_cast %81 : vector<1x1x128xf32> to vector<1x128xf32>
    %cst_40 = arith.constant dense<0.000000e+00> : vector<16xf32>
    %83 = vector.multi_reduction <add>, %78, %cst_40 [1] : vector<16x128xf32> to vector<16xf32>
    %84 = vector.shape_cast %83 : vector<16xf32> to vector<16x1xf32>
    %cst_41 = arith.constant 1.280000e+02 : f32
    %85 = vector.broadcast %cst_41 : f32 to vector<16x1xf32>
    %86 = arith.divf %84, %85 : vector<16x1xf32>
    %87 = vector.broadcast %86 : vector<16x1xf32> to vector<16x128xf32>
    %88 = arith.subf %78, %87 : vector<16x128xf32>
    %89 = arith.mulf %88, %88 : vector<16x128xf32>
    %cst_42 = arith.constant dense<0.000000e+00> : vector<16xf32>
    %90 = vector.multi_reduction <add>, %89, %cst_42 [1] : vector<16x128xf32> to vector<16xf32>
    %91 = vector.shape_cast %90 : vector<16xf32> to vector<16x1xf32>
    %cst_43 = arith.constant 1.280000e+02 : f32
    %92 = vector.broadcast %cst_43 : f32 to vector<16x1xf32>
    %93 = arith.divf %91, %92 : vector<16x1xf32>
    %94 = vector.broadcast %86 : vector<16x1xf32> to vector<16x128xf32>
    %95 = arith.subf %78, %94 : vector<16x128xf32>
    %cst_44 = arith.constant 9.99999974E-6 : f32
    %96 = vector.broadcast %cst_44 : f32 to vector<16x1xf32>
    %97 = arith.addf %93, %96 : vector<16x1xf32>
    %98 = math.rsqrt %97 : vector<16x1xf32>
    %99 = vector.broadcast %98 : vector<16x1xf32> to vector<16x128xf32>
    %100 = arith.mulf %95, %99 : vector<16x128xf32>
    %101 = vector.broadcast %80 : vector<1x128xf32> to vector<16x128xf32>
    %102 = arith.mulf %100, %101 : vector<16x128xf32>
    %103 = vector.broadcast %82 : vector<1x128xf32> to vector<16x128xf32>
    %104 = arith.addf %102, %103 : vector<16x128xf32>
    %c0_45 = arith.constant 0 : index
    %c0_46 = arith.constant 0 : index
    %c0_47 = arith.constant 0 : index
    %105 = vector.load %arg14[%c0_45, %c0_46, %c0_47] : memref<1x128x512xbf16, #tpu.memory_space<vmem>>, vector<1x128x512xbf16>
    %106 = vector.shape_cast %105 : vector<1x128x512xbf16> to vector<128x512xbf16>
    %107 = arith.truncf %104 : vector<16x128xf32> to vector<16x128xbf16>
    %cst_48 = arith.constant dense<0.000000e+00> : vector<16x512xf32>
    %108 = tpu.matmul %107, %106, %cst_48 {dimension_numbers = #tpu.dot_dimension_numbers<[1], [0], [0], [1], [0, 0, 1, 1], [], []>} : vector<16x128xbf16>, vector<128x512xbf16>, vector<16x512xf32> -> vector<16x512xf32>
    %c0_49 = arith.constant 0 : index
    %c0_50 = arith.constant 0 : index
    %c0_51 = arith.constant 0 : index
    %109 = vector.load %arg15[%c0_49, %c0_50, %c0_51] : memref<1x1x512xf32, #tpu.memory_space<vmem>>, vector<1x1x512xf32>
    %110 = vector.shape_cast %109 : vector<1x1x512xf32> to vector<1x512xf32>
    %111 = vector.broadcast %110 : vector<1x512xf32> to vector<16x512xf32>
    %112 = arith.addf %108, %111 : vector<16x512xf32>
    %cst_52 = arith.constant 5.000000e-01 : f32
    %113 = vector.broadcast %cst_52 : f32 to vector<16x512xf32>
    %114 = arith.mulf %113, %112 : vector<16x512xf32>
    %cst_53 = arith.constant 0.707106769 : f32
    %115 = vector.broadcast %cst_53 : f32 to vector<16x512xf32>
    %116 = arith.mulf %112, %115 : vector<16x512xf32>
    %117 = math.erf %116 : vector<16x512xf32>
    %cst_54 = arith.constant 1.000000e+00 : f32
    %118 = vector.broadcast %cst_54 : f32 to vector<16x512xf32>
    %119 = arith.addf %118, %117 : vector<16x512xf32>
    %120 = arith.mulf %114, %119 : vector<16x512xf32>
    %c0_55 = arith.constant 0 : index
    %c0_56 = arith.constant 0 : index
    %c0_57 = arith.constant 0 : index
    %121 = vector.load %arg16[%c0_55, %c0_56, %c0_57] : memref<1x512x128xbf16, #tpu.memory_space<vmem>>, vector<1x512x128xbf16>
    %122 = vector.shape_cast %121 : vector<1x512x128xbf16> to vector<512x128xbf16>
    %123 = arith.truncf %120 : vector<16x512xf32> to vector<16x512xbf16>
    %cst_58 = arith.constant dense<0.000000e+00> : vector<16x128xf32>
    %124 = tpu.matmul %123, %122, %cst_58 {dimension_numbers = #tpu.dot_dimension_numbers<[1], [0], [0], [1], [0, 0, 1, 1], [], []>} : vector<16x512xbf16>, vector<512x128xbf16>, vector<16x128xf32> -> vector<16x128xf32>
    %125 = arith.addf %78, %124 : vector<16x128xf32>
    %c0_59 = arith.constant 0 : index
    %c0_60 = arith.constant 0 : index
    %c0_61 = arith.constant 0 : index
    %126 = vector.load %arg17[%c0_59, %c0_60, %c0_61] : memref<1x1x128xf32, #tpu.memory_space<vmem>>, vector<1x1x128xf32>
    %127 = vector.shape_cast %126 : vector<1x1x128xf32> to vector<1x128xf32>
    %128 = vector.broadcast %127 : vector<1x128xf32> to vector<16x128xf32>
    %129 = arith.addf %125, %128 : vector<16x128xf32>
    %c0_62 = arith.constant 0 : index
    %c0_63 = arith.constant 0 : index
    %130 = vector.load %arg21[%c0_62, %c0_63] : memref<16x128xf32, #tpu.memory_space<vmem>>, vector<16x128xf32>
    tpu.vector_store %arg21[%c0_62, %c0_63], %129 {strides = array<i32>} : memref<16x128xf32, #tpu.memory_space<vmem>>, vector<16x128xf32>,
    %c1_i32 = arith.constant 1 : i32
    %131 = arith.cmpi eq, %arg0, %c1_i32 : i32
    %132 = arith.extui %131 : i1 to i32
    %c0_i32_64 = arith.constant 0 : i32
    %133 = arith.cmpi ne, %132, %c0_i32_64 : i32
    scf.if %133 {
      %c0_65 = arith.constant 0 : index
      %c0_66 = arith.constant 0 : index
      %134 = vector.load %arg18[%c0_65, %c0_66] : memref<1x128xf32, #tpu.memory_space<vmem>>, vector<1x128xf32>
      %c0_67 = arith.constant 0 : index
      %c0_68 = arith.constant 0 : index
      %135 = vector.load %arg19[%c0_67, %c0_68] : memref<1x128xf32, #tpu.memory_space<vmem>>, vector<1x128xf32>
      %cst_69 = arith.constant dense<0.000000e+00> : vector<16xf32>
      %136 = vector.multi_reduction <add>, %129, %cst_69 [1] : vector<16x128xf32> to vector<16xf32>
      %137 = vector.shape_cast %136 : vector<16xf32> to vector<16x1xf32>
      %cst_70 = arith.constant 1.280000e+02 : f32
      %138 = vector.broadcast %cst_70 : f32 to vector<16x1xf32>
      %139 = arith.divf %137, %138 : vector<16x1xf32>
      %140 = vector.broadcast %139 : vector<16x1xf32> to vector<16x128xf32>
      %141 = arith.subf %129, %140 : vector<16x128xf32>
      %142 = arith.mulf %141, %141 : vector<16x128xf32>
      %cst_71 = arith.constant dense<0.000000e+00> : vector<16xf32>
      %143 = vector.multi_reduction <add>, %142, %cst_71 [1] : vector<16x128xf32> to vector<16xf32>
      %144 = vector.shape_cast %143 : vector<16xf32> to vector<16x1xf32>
      %cst_72 = arith.constant 1.280000e+02 : f32
      %145 = vector.broadcast %cst_72 : f32 to vector<16x1xf32>
      %146 = arith.divf %144, %145 : vector<16x1xf32>
      %147 = vector.broadcast %139 : vector<16x1xf32> to vector<16x128xf32>
      %148 = arith.subf %129, %147 : vector<16x128xf32>
      %cst_73 = arith.constant 9.99999974E-6 : f32
      %149 = vector.broadcast %cst_73 : f32 to vector<16x1xf32>
      %150 = arith.addf %146, %149 : vector<16x1xf32>
      %151 = math.rsqrt %150 : vector<16x1xf32>
      %152 = vector.broadcast %151 : vector<16x1xf32> to vector<16x128xf32>
      %153 = arith.mulf %148, %152 : vector<16x128xf32>
      %154 = vector.broadcast %134 : vector<1x128xf32> to vector<16x128xf32>
      %155 = arith.mulf %153, %154 : vector<16x128xf32>
      %156 = vector.broadcast %135 : vector<1x128xf32> to vector<16x128xf32>
      %157 = arith.addf %155, %156 : vector<16x128xf32>
      %c0_74 = arith.constant 0 : index
      %c0_75 = arith.constant 0 : index
      %158 = vector.load %arg20[%c0_74, %c0_75] : memref<16x128xf32, #tpu.memory_space<vmem>>, vector<16x128xf32>
      tpu.vector_store %arg20[%c0_74, %c0_75], %157 {strides = array<i32>} : memref<16x128xf32, #tpu.memory_space<vmem>>, vector<16x128xf32>,
    } else {
    }
    return
  }
  func.func @transform_0(%arg0: i32) -> (i32, i32) {
    %c0_i32 = arith.constant 0 : i32
    %c0_i32_0 = arith.constant 0 : i32
    %c0_i32_1 = arith.constant 0 : i32
    return %c0_i32, %c0_i32_0 : i32, i32
  }
  func.func @transform_1(%arg0: i32) -> (i32, i32) {
    %c0_i32 = arith.constant 0 : i32
    %c0_i32_0 = arith.constant 0 : i32
    %c0_i32_1 = arith.constant 0 : i32
    return %c0_i32, %c0_i32_0 : i32, i32
  }
  func.func @transform_2(%arg0: i32) -> (i32, i32) {
    %c0_i32 = arith.constant 0 : i32
    %c0_i32_0 = arith.constant 0 : i32
    %c0_i32_1 = arith.constant 0 : i32
    return %c0_i32, %c0_i32_0 : i32, i32
  }
  func.func @transform_3(%arg0: i32) -> (i32, i32) {
    %c0_i32 = arith.constant 0 : i32
    %c0_i32_0 = arith.constant 0 : i32
    %c0_i32_1 = arith.constant 0 : i32
    return %c0_i32, %c0_i32_0 : i32, i32
  }
  func.func @transform_4(%arg0: i32) -> (i32, i32) {
    %c0_i32 = arith.constant 0 : i32
    %c0_i32_0 = arith.constant 0 : i32
    %c0_i32_1 = arith.constant 0 : i32
    return %c0_i32, %c0_i32_0 : i32, i32
  }
  func.func @transform_5(%arg0: i32) -> (i32, i32, i32) {
    %c0_i32 = arith.constant 0 : i32
    %c0_i32_0 = arith.constant 0 : i32
    %c0_i32_1 = arith.constant 0 : i32
    return %arg0, %c0_i32, %c0_i32_0 : i32, i32, i32
  }
  func.func @transform_6(%arg0: i32) -> (i32, i32, i32) {
    %c0_i32 = arith.constant 0 : i32
    %c0_i32_0 = arith.constant 0 : i32
    %c0_i32_1 = arith.constant 0 : i32
    return %arg0, %c0_i32, %c0_i32_0 : i32, i32, i32
  }
  func.func @transform_7(%arg0: i32) -> (i32, i32, i32) {
    %c0_i32 = arith.constant 0 : i32
    %c0_i32_0 = arith.constant 0 : i32
    %c0_i32_1 = arith.constant 0 : i32
    return %arg0, %c0_i32, %c0_i32_0 : i32, i32, i32
  }
  func.func @transform_8(%arg0: i32) -> (i32, i32, i32) {
    %c0_i32 = arith.constant 0 : i32
    %c0_i32_0 = arith.constant 0 : i32
    %c0_i32_1 = arith.constant 0 : i32
    return %arg0, %c0_i32, %c0_i32_0 : i32, i32, i32
  }
  func.func @transform_9(%arg0: i32) -> (i32, i32, i32) {
    %c0_i32 = arith.constant 0 : i32
    %c0_i32_0 = arith.constant 0 : i32
    %c0_i32_1 = arith.constant 0 : i32
    return %arg0, %c0_i32, %c0_i32_0 : i32, i32, i32
  }
  func.func @transform_10(%arg0: i32) -> (i32, i32, i32) {
    %c0_i32 = arith.constant 0 : i32
    %c0_i32_0 = arith.constant 0 : i32
    %c0_i32_1 = arith.constant 0 : i32
    return %arg0, %c0_i32, %c0_i32_0 : i32, i32, i32
  }
  func.func @transform_11(%arg0: i32) -> (i32, i32, i32) {
    %c0_i32 = arith.constant 0 : i32
    %c0_i32_0 = arith.constant 0 : i32
    %c0_i32_1 = arith.constant 0 : i32
    return %arg0, %c0_i32, %c0_i32_0 : i32, i32, i32
  }
  func.func @transform_12(%arg0: i32) -> (i32, i32, i32) {
    %c0_i32 = arith.constant 0 : i32
    %c0_i32_0 = arith.constant 0 : i32
    %c0_i32_1 = arith.constant 0 : i32
    return %arg0, %c0_i32, %c0_i32_0 : i32, i32, i32
  }
  func.func @transform_13(%arg0: i32) -> (i32, i32, i32) {
    %c0_i32 = arith.constant 0 : i32
    %c0_i32_0 = arith.constant 0 : i32
    %c0_i32_1 = arith.constant 0 : i32
    return %arg0, %c0_i32, %c0_i32_0 : i32, i32, i32
  }
  func.func @transform_14(%arg0: i32) -> (i32, i32, i32) {
    %c0_i32 = arith.constant 0 : i32
    %c0_i32_0 = arith.constant 0 : i32
    %c0_i32_1 = arith.constant 0 : i32
    return %arg0, %c0_i32, %c0_i32_0 : i32, i32, i32
  }
  func.func @transform_15(%arg0: i32) -> (i32, i32, i32) {
    %c0_i32 = arith.constant 0 : i32
    %c0_i32_0 = arith.constant 0 : i32
    %c0_i32_1 = arith.constant 0 : i32
    return %arg0, %c0_i32, %c0_i32_0 : i32, i32, i32
  }
  func.func @transform_16(%arg0: i32) -> (i32, i32, i32) {
    %c0_i32 = arith.constant 0 : i32
    %c0_i32_0 = arith.constant 0 : i32
    %c0_i32_1 = arith.constant 0 : i32
    return %arg0, %c0_i32, %c0_i32_0 : i32, i32, i32
  }
  func.func @transform_17(%arg0: i32) -> (i32, i32) {
    %c0_i32 = arith.constant 0 : i32
    %c0_i32_0 = arith.constant 0 : i32
    %c0_i32_1 = arith.constant 0 : i32
    return %c0_i32, %c0_i32_0 : i32, i32
  }
  func.func @transform_18(%arg0: i32) -> (i32, i32) {
    %c0_i32 = arith.constant 0 : i32
    %c0_i32_0 = arith.constant 0 : i32
    %c0_i32_1 = arith.constant 0 : i32
    return %c0_i32, %c0_i32_0 : i32, i32
  }
  func.func @transform_19(%arg0: i32) -> (i32, i32) {
    %c0_i32 = arith.constant 0 : i32
    %c0_i32_0 = arith.constant 0 : i32
    %c0_i32_1 = arith.constant 0 : i32
    return %c0_i32, %c0_i32_0 : i32, i32
  }
}

</mosaic_0001>

<bundles_post_ra>
// kernel: eq.27
= control target key start
LH: loop header
LB: loop body
LE: loop exit
PB: predicated region body
PF: predicated region fallthrough
CT: control target
= control target key end

     0   :  { %s37_s8 = smov 16   ;;  %s38_s9 = smov 32   ;;  %vm7_vm0 = vcmask 130048   ;;  %vm13_vm1 = vcmask 523648   ;;  %vm19_vm2 = vcmask 392448   ;;  %vm25_vm3 = vcmask 261248   ;;  %s55_s0 = inlined_call_operand.vmem [shape: s32[4,16], index: 0, kind: input, shape index: {}]   ;;  %s56_s1 = inlined_call_operand.vmem [shape: s32[64], index: 1, kind: output, shape index: {}]  }
   0x1   :  { %v4_v0 = vld [vmem:[%s55_s0] sm:$0xf]  ;;  %s36_s0 = smov 48  }
   0x2   :  { %5 = vst [vmem:[#allocation1] sm:$0xf] %v4_v0 }
   0x9   :  { %v10_v1 = vld [vmem:[#allocation1 + $0x3] sm:$0x1]   ;;  %v22_v2 = vld [vmem:[#allocation1 + $0x1] sm:$0x1]   ;;  %v16_v3 = vld [vmem:[#allocation1 + $0x2] sm:$0x1]  }
   0xa   :  { %11 = vrot.lane.b32.xlu0 %v10_v1, %s36_s0  ;;  %23 = vrot.lane.b32.xlu1 %v22_v2, %s37_s8  ;;  %v6_v4 = vld [vmem:[#allocation1] sm:$0x1]  }
   0xb   :  { %8 = vst.msk [vmem:[#allocation0] sm:$0x1] %vm7_vm0, %v6_v4  }
  0x12   :  { %17 = vrot.lane.b32.xlu0 %v16_v3, %s38_s9 }
  0x7c   :  { %v12_v5 = vpop.permute.xlu0 %11   ;;  %v24_v6 = vpop.permute.xlu1 %23  }
  0x7d   :  { %14 = vst.msk [vmem:[#allocation0] sm:$0x1] %vm13_vm1, %v12_v5  }
  0x84   :  { %v18_v7 = vpop.permute.xlu0 %17  }
  0x85   :  { %20 = vst.msk [vmem:[#allocation0] sm:$0x1] %vm19_vm2, %v18_v7  }
  0x86   :  { %26 = vst.msk [vmem:[#allocation0] sm:$0x1] %vm25_vm3, %v24_v6  }
  0x8d   :  { %v29_v8 = vld [vmem:[#allocation0] sm:$0x1] }
  0x8e   :  { %32 = vst [vmem:[%s56_s1] sm:$0x1] %v29_v8 }

// kernel: vit_encoder.1
= control target key start
LH: loop header
LB: loop body
LE: loop exit
PB: predicated region body
PF: predicated region fallthrough
CT: control target
= control target key end

     0   :  { %s4943_s0 = inlined_call_operand.vmem [shape: bf16[16,768], index: 0, kind: input, shape index: {}]   ;;  %s4944_s1 = inlined_call_operand.vmem [shape: bf16[768,128], index: 1, kind: input, shape index: {}]   ;;  %s4945_s2 = inlined_call_operand.vmem [shape: f32[16,128], index: 2, kind: input, shape index: {}]   ;;  %s4946_s3 = inlined_call_operand.vmem [shape: f32[64,16], index: 3, kind: input, shape index: {}]   ;;  %s4947_s4 = inlined_call_operand.vmem [shape: f32[64,128], index: 4, kind: input, shape index: {}]   ;;  %s4948_s5 = inlined_call_operand.vmem [shape: f32[2,1,128], index: 5, kind: input, shape index: {}]   ;;  %s4949_s6 = inlined_call_operand.vmem [shape: f32[2,1,128], index: 6, kind: input, shape index: {}]   ;;  %s4950_s7 = inlined_call_operand.vmem [shape: bf16[2,128,384], index: 7, kind: input, shape index: {}]   ;;  %s4951_s8 = inlined_call_operand.vmem [shape: f32[2,1,384], index: 8, kind: input, shape index: {}]   ;;  %s4952_s9 = inlined_call_operand.vmem [shape: bf16[2,128,128], index: 9, kind: input, shape index: {}]   ;;  %s4953_s10 = inlined_call_operand.vmem [shape: f32[2,1,128], index: 10, kind: input, shape index: {}]   ;;  %s4954_s11 = inlined_call_operand.vmem [shape: f32[2,1,128], index: 11, kind: input, shape index: {}]   ;;  %s4955_s12 = inlined_call_operand.vmem [shape: f32[2,1,128], index: 12, kind: input, shape index: {}]   ;;  %s4956_s13 = inlined_call_operand.vmem [shape: bf16[2,128,512], index: 13, kind: input, shape index: {}]   ;;  %s4957_s14 = inlined_call_operand.vmem [shape: f32[2,1,512], index: 14, kind: input, shape index: {}]   ;;  %s4958_s15 = inlined_call_operand.vmem [shape: bf16[2,512,128], index: 15, kind: input, shape index: {}]   ;;  %s4959_s16 = inlined_call_operand.vmem [shape: f32[2,1,128], index: 16, kind: input, shape index: {}]   ;;  %s4960_s17 = inlined_call_operand.vmem [shape: f32[1,128], index: 17, kind: input, shape index: {}]   ;;  %s4961_s18 = inlined_call_operand.vmem [shape: f32[1,128], index: 18, kind: input, shape index: {}]   ;;  %s4962_s19 = inlined_call_operand.vmem [shape: f32[16,128], index: 19, kind: output, shape index: {}]  }
   0x1   :  { %4970 = sst [smem:[#allocation4_spill]] %s4943_s0  ;;  %s4005_s0 = smov 0  }
   0x2   :  { %4971 = sst [smem:[#allocation5_spill]] %s4944_s1 }
   0x3   :  { %4972 = sst [smem:[#allocation6_spill]] %s4945_s2 }
   0x4   :  { %4973 = sst [smem:[#allocation7_spill]] %s4946_s3 }
   0x5   :  { %4974 = sst [smem:[#allocation8_spill]] %s4947_s4 }
   0x6   :  { %4975 = sst [smem:[#allocation9_spill]] %s4950_s7 }
   0x7   :  { %4976 = sst [smem:[#allocation10_spill]] %s4951_s8 }
   0x8   :  { %4977 = sst [smem:[#allocation11_spill]] %s4952_s9 }
   0x9   :  { %4978 = sst [smem:[#allocation12_spill]] %s4960_s17 }
   0xa   :  { %4979 = sst [smem:[#allocation13_spill]] %s4961_s18 }
   0xb   :  { %4980 = sst [smem:[#allocation14_spill]] %s4962_s19 }
   0xc LB: > { %4981 = sst [smem:[#allocation3_spill]] %s3902_s0  ;;  %s4011_s30 = sadd.s32 4294967295, %s3902_s0   ;;  %s3902_s0 = sphi %s4005_s0, %s29_s0  }
   0xd   : > { %p3037_p0 = scmp.ge.s32.totalorder %s3902_s0, 1  ;;  %p628_p1 = scmp.lt.s32.totalorder %s3902_s0, 3 }
   0xf   : > { %p629_p2 = pnand %p3037_p0, %p628_p1 }
  0x10   : > { %p720_p3 = scmp.lt.s32.totalorder (!%p629_p2), %s4011_s30, 1  ;;  %s4982_s9 = sld [smem:[#allocation11_spill]] (!%p629_p2) }
  0x11   : > { %632 = sbr.rel (%p629_p2) target bundleno = 2315 (0x90b), region = 96  ;;  %s4983_s7 = sld [smem:[#allocation9_spill]] (!%p629_p2) }
  0x12   : > { %s4984_s8 = sld [smem:[#allocation10_spill]] (!%p629_p2)  ;;  %p3046_p4 = scmp.ne.s32.totalorder (!%p629_p2), %s4011_s30, 0 }
  0x16   : > { %s4017_s20 = scalar_select %p720_p3, %s4011_s30, 1 }
  0x17   : > { %s4986_s2 = sld [smem:[#allocation4_spill]] (!%p3046_p4) }
  0x18   : > { %s3815_s25 = smul.u32 192, %s4017_s20  ;;  %s3662_s3 = sshll.u32 %s4017_s20, 6 }
  0x19   : > { %s3816_s26 = smul.u32 3, %s4017_s20  ;;  %s4033_s29 = scalar_lea.vmem %s4982_s9, %s3662_s3 }
  0x1a   : > { %s4038_s0 = scalar_lea.vmem %s4983_s7, %s3815_s25  ;;  %s3663_s21 = sshll.u32 %s4017_s20, 8 }
  0x1b   : > { %s4047_s24 = scalar_lea.vmem %s4984_s8, %s3816_s26  ;;  %s4061_s7 = scalar_lea.vmem %s4956_s13, %s3663_s21 }
  0x1c   : > { %s3043_s19 = sshll.u32 %s4017_s20, 2  ;;  %s4072_s4 = scalar_lea.vmem %s4958_s15, %s3663_s21 }
  0x1d   : > { %s4067_s26 = scalar_lea.vmem %s4957_s14, %s3043_s19  ;;  %770 = sbr.rel (%p3046_p4) target bundleno = 239 (0xef), region = 100 }
  0x1e   : > { %s4985_s9 = sld [smem:[#allocation5_spill]] (!%p3046_p4) }
  0x1f   : > { %s4987_s8 = sld [smem:[#allocation6_spill]] (!%p3046_p4) }
  0x22   : > { %v3049_v30 = vld [vmem:[%s4986_s2] sm:$0xf]  ;;  %v3668_v31 = vld [vmem:[%s4986_s2 + $0x14] sm:$0xf0]  ;;  %v3665_v32 = vld [vmem:[%s4986_s2 + $0x4] sm:$0xf] }
  0x23   : > { %v3051_v33 = vld [vmem:[%s4986_s2 + $0x18] sm:$0xf0]  ;;  %v3057_v38 = vld [vmem:[%s4986_s2 + $0x8] sm:$0xf]  ;;  %v3669_v39 = vld [vmem:[%s4986_s2 + $0x1c] sm:$0xf0]  ;;  %v3050_v40 = vor.u32 %v3668_v31, %v3049_v30 }
  0x24   : > { %v3678_v0 = vld [vmem:[%s4985_s9 + $0x38] sm:$0xff]  ;;  %v3677_v4 = vld [vmem:[%s4985_s9 + $0x30] sm:$0xff]  ;;  %v3676_v8 = vld [vmem:[%s4985_s9 + $0x28] sm:$0xff]  ;;  %v3054_v43 = vor.u32 %v3665_v32, %v3051_v33  ;;  %v3058_v46 = vor.u32 %v3669_v39, %v3057_v38 }
  0x25   : > { %v3686_v1 = vld [vmem:[%s4985_s9 + $0x78] sm:$0xff]  ;;  %1193 = vmatpush.bf16.msra.mxu0 %v3678_v0  ;;  %v3685_v5 = vld [vmem:[%s4985_s9 + $0x70] sm:$0xff]  ;;  %v3684_v9 = vld [vmem:[%s4985_s9 + $0x68] sm:$0xff] }
  0x26   : > { %v3694_v2 = vld [vmem:[%s4985_s9 + $0xb8] sm:$0xff]  ;;  %1207 = vmatpush.bf16.msra.mxu1 %v3686_v1  ;;  %v3693_v6 = vld [vmem:[%s4985_s9 + $0xb0] sm:$0xff]  ;;  %v3692_v10 = vld [vmem:[%s4985_s9 + $0xa8] sm:$0xff] }
  0x27   : > { %v3702_v3 = vld [vmem:[%s4985_s9 + $0xf8] sm:$0xff]  ;;  %1221 = vmatpush.bf16.msra.mxu2 %v3694_v2  ;;  %v3701_v7 = vld [vmem:[%s4985_s9 + $0xf0] sm:$0xff]  ;;  %v3700_v11 = vld [vmem:[%s4985_s9 + $0xe8] sm:$0xff] }
  0x28   : > { %1235 = vmatpush.bf16.msra.mxu3 %v3702_v3  ;;  %v3675_v12 = vld [vmem:[%s4985_s9 + $0x20] sm:$0xff]  ;;  %v3674_v16 = vld [vmem:[%s4985_s9 + $0x18] sm:$0xff]  ;;  %v3673_v20 = vld [vmem:[%s4985_s9 + $0x10] sm:$0xff] }
  0x29   : > { %1194 = vmatpush.bf16.msra.mxu0 %v3677_v4  ;;  %v3683_v13 = vld [vmem:[%s4985_s9 + $0x60] sm:$0xff]  ;;  %v3682_v17 = vld [vmem:[%s4985_s9 + $0x58] sm:$0xff]  ;;  %v3681_v21 = vld [vmem:[%s4985_s9 + $0x50] sm:$0xff] }
  0x2a   : > { %1208 = vmatpush.bf16.msra.mxu1 %v3685_v5  ;;  %v3691_v14 = vld [vmem:[%s4985_s9 + $0xa0] sm:$0xff]  ;;  %v3690_v18 = vld [vmem:[%s4985_s9 + $0x98] sm:$0xff]  ;;  %v3689_v22 = vld [vmem:[%s4985_s9 + $0x90] sm:$0xff] }
  0x2b   : > { %1222 = vmatpush.bf16.msra.mxu2 %v3693_v6  ;;  %v3699_v15 = vld [vmem:[%s4985_s9 + $0xe0] sm:$0xff]  ;;  %v3698_v19 = vld [vmem:[%s4985_s9 + $0xd8] sm:$0xff]  ;;  %v3697_v23 = vld [vmem:[%s4985_s9 + $0xd0] sm:$0xff] }
  0x2c   : > { %1236 = vmatpush.bf16.msra.mxu3 %v3701_v7  ;;  %v3672_v24 = vld [vmem:[%s4985_s9 + $0x8] sm:$0xff]  ;;  %v3671_v28 = vld [vmem:[%s4985_s9] sm:$0xff]  ;;  %v3710_v34 = vld [vmem:[%s4985_s9 + $0x138] sm:$0xff] }
  0x2d   : > { %1195 = vmatpush.bf16.msra.mxu0 %v3676_v8  ;;  %v3680_v25 = vld [vmem:[%s4985_s9 + $0x48] sm:$0xff]  ;;  %v3679_v29 = vld [vmem:[%s4985_s9 + $0x40] sm:$0xff]  ;;  %v3718_v35 = vld [vmem:[%s4985_s9 + $0x178] sm:$0xff] }
  0x2e   : > { %1209 = vmatpush.bf16.msra.mxu1 %v3684_v9  ;;  %v3688_v26 = vld [vmem:[%s4985_s9 + $0x88] sm:$0xff]  ;;  %v3687_v36 = vld [vmem:[%s4985_s9 + $0x80] sm:$0xff]  ;;  %v3709_v44 = vld [vmem:[%s4985_s9 + $0x130] sm:$0xff] }
  0x2f   : > { %1223 = vmatpush.bf16.msra.mxu2 %v3692_v10  ;;  %v3696_v27 = vld [vmem:[%s4985_s9 + $0xc8] sm:$0xff]  ;;  %v3695_v37 = vld [vmem:[%s4985_s9 + $0xc0] sm:$0xff]  ;;  %v3717_v45 = vld [vmem:[%s4985_s9 + $0x170] sm:$0xff] }
  0x30   : > { %1237 = vmatpush.bf16.msra.mxu3 %v3700_v11  ;;  %v3666_v41 = vld [vmem:[%s4986_s2 + $0xc] sm:$0xf]  ;;  %v3059_v42 = vld [vmem:[%s4986_s2 + $0x20] sm:$0xf0]  ;;  %v3706_v52 = vld [vmem:[%s4985_s9 + $0x118] sm:$0xff] }
  0x31   : > { %1196 = vmatpush.bf16.msra.mxu0 %v3675_v12  ;;  %v3062_v47 = vor.u32 %v3666_v41, %v3059_v42  ;;  %v3708_v48 = vld [vmem:[%s4985_s9 + $0x128] sm:$0xff]  ;;  %v3707_v50 = vld [vmem:[%s4985_s9 + $0x120] sm:$0xff]  ;;  %v3714_v53 = vld [vmem:[%s4985_s9 + $0x158] sm:$0xff] }
  0x32   : > { %1210 = vmatpush.bf16.msra.mxu1 %v3683_v13  ;;  %v3716_v49 = vld [vmem:[%s4985_s9 + $0x168] sm:$0xff]  ;;  %v3715_v51 = vld [vmem:[%s4985_s9 + $0x160] sm:$0xff]  ;;  %v3705_v54 = vld [vmem:[%s4985_s9 + $0x110] sm:$0xff] }
  0x33   : > { %1224 = vmatpush.bf16.msra.mxu2 %v3691_v14  ;;  %v3713_v55 = vld [vmem:[%s4985_s9 + $0x150] sm:$0xff]  ;;  %v3704_v56 = vld [vmem:[%s4985_s9 + $0x108] sm:$0xff]  ;;  %v3703_v58 = vld [vmem:[%s4985_s9 + $0x100] sm:$0xff] }
  0x34   : > { %1238 = vmatpush.bf16.msra.mxu3 %v3699_v15  ;;  %v3712_v57 = vld [vmem:[%s4985_s9 + $0x148] sm:$0xff]  ;;  %v3711_v59 = vld [vmem:[%s4985_s9 + $0x140] sm:$0xff]  ;;  %v3065_v60 = vld [vmem:[%s4986_s2 + $0x10] sm:$0xf] }
  0x35   : > { %1197 = vmatpush.bf16.msra.mxu0 %v3674_v16  ;;  %v3670_v61 = vld [vmem:[%s4986_s2 + $0x24] sm:$0xf0]  ;;  %v3667_v62 = vld [vmem:[%s4986_s2 + $0x14] sm:$0xf]  ;;  %v3067_v63 = vld [vmem:[%s4986_s2 + $0x28] sm:$0xf0] }
  0x36   : > { %1211 = vmatpush.bf16.msra.mxu1 %v3682_v17  ;;  %v3066_v0 = vor.u32 %v3670_v61, %v3065_v60  ;;  %v3070_v1 = vor.u32 %v3667_v62, %v3067_v63  ;;  %v873_v4 = vld [vmem:[%s4987_s8] sm:$0xff]  ;;  %v874_v8 = vld [vmem:[%s4987_s8 + $0x8] sm:$0xff] }
  0x37   : > { %1225 = vmatpush.bf16.msra.mxu2 %v3690_v18 }
  0x38   : > { %1239 = vmatpush.bf16.msra.mxu3 %v3698_v19 }
  0x39   : > { %1198 = vmatpush.bf16.msra.mxu0 %v3673_v20 }
  0x3a   : > { %1212 = vmatpush.bf16.msra.mxu1 %v3681_v21 }
  0x3b   : > { %1226 = vmatpush.bf16.msra.mxu2 %v3689_v22 }
  0x3c   : > { %1240 = vmatpush.bf16.msra.mxu3 %v3697_v23 }
  0x3d   : > { %1199 = vmatpush.bf16.msra.mxu0 %v3672_v24 }
  0x3e   : > { %1213 = vmatpush.bf16.msra.mxu1 %v3680_v25 }
  0x3f   : > { %1227 = vmatpush.bf16.msra.mxu2 %v3688_v26 }
  0x40   : > { %1241 = vmatpush.bf16.msra.mxu3 %v3696_v27 }
  0x41   : > { %1200 = vmatpush.bf16.msra.mxu0 %v3671_v28 }
  0x42   : > { %1214 = vmatpush.bf16.msra.mxu1 %v3679_v29 }
  0x43   : > { %1228 = vmatpush.bf16.msra.mxu2 %v3687_v36 }
  0x44   : > { %1242 = vmatpush.bf16.msra.mxu3 %v3695_v37  ;;  %1201 = vmatmul.bf16.vlgmr.msra.gmra.mxu0 %v3050_v40 }
  0x45   : > { %1249 = vmatpush.bf16.msrb.mxu0 %v3710_v34  ;;  %1215 = vmatmul.bf16.vlgmr.msra.gmra.mxu1 %v3054_v43 }
  0x46   : > { %1263 = vmatpush.bf16.msrb.mxu1 %v3718_v35  ;;  %1229 = vmatmul.bf16.vlgmr.msra.gmra.mxu2 %v3058_v46 }
  0x47   : > { %1243 = vmatmul.bf16.vlgmr.msra.gmra.mxu3 %v3062_v47 }
  0x49   : > { %1250 = vmatpush.bf16.msrb.mxu0 %v3709_v44 }
  0x4a   : > { %1264 = vmatpush.bf16.msrb.mxu1 %v3717_v45 }
  0x4d   : > { %1251 = vmatpush.bf16.msrb.mxu0 %v3708_v48 }
  0x4e   : > { %1265 = vmatpush.bf16.msrb.mxu1 %v3716_v49 }
  0x51   : > { %1252 = vmatpush.bf16.msrb.mxu0 %v3707_v50 }
  0x52   : > { %1266 = vmatpush.bf16.msrb.mxu1 %v3715_v51 }
  0x55   : > { %1253 = vmatpush.bf16.msrb.mxu0 %v3706_v52 }
  0x56   : > { %1267 = vmatpush.bf16.msrb.mxu1 %v3714_v53 }
  0x59   : > { %1254 = vmatpush.bf16.msrb.mxu0 %v3705_v54 }
  0x5a   : > { %1268 = vmatpush.bf16.msrb.mxu1 %v3713_v55 }
  0x5d   : > { %1255 = vmatpush.bf16.msrb.mxu0 %v3704_v56 }
  0x5e   : > { %1269 = vmatpush.bf16.msrb.mxu1 %v3712_v57 }
  0x61   : > { %1256 = vmatpush.bf16.msrb.mxu0 %v3703_v58 }
  0x62   : > { %1270 = vmatpush.bf16.msrb.mxu1 %v3711_v59 }
  0x64   : > { %1257 = vmatmul.bf16.vlgmr.msrb.gmra.mxu0 %v3066_v0 }
  0x65   : > { %1271 = vmatmul.bf16.vlgmr.msrb.gmra.mxu1 %v3070_v1 }
  0xc1   : > { %v1202_v2 = vpop.f32.mrf.mxu0 }
  0xc2   : > { %v1216_v3 = vpop.f32.mrf.mxu1  ;;  %v1203_v5 = vadd.f32 %v1202_v2, %v873_v4 }
  0xc4   : > { %v1217_v7 = vadd.f32 %v1216_v3, %v1203_v5 }
  0xc9   : > { %v1230_v6 = vpop.f32.mrf.mxu2  ;;  %v1204_v9 = vpop.f32.mrf.mxu0 }
  0xca   : > { %v1218_v10 = vpop.f32.mrf.mxu1  ;;  %v1244_v11 = vpop.f32.mrf.mxu3  ;;  %v1231_v12 = vadd.f32 %v1230_v6, %v1217_v7  ;;  %v1205_v13 = vadd.f32 %v1204_v9, %v874_v8 }
  0xcc   : > { %v1245_v14 = vadd.f32 %v1244_v11, %v1231_v12  ;;  %v1219_v15 = vadd.f32 %v1218_v10, %v1205_v13 }
  0xd1   : > { %v1232_v16 = vpop.f32.mrf.mxu2 }
  0xd2   : > { %v1233_v20 = vadd.f32 %v1232_v16, %v1219_v15  ;;  %v1246_v22 = vpop.f32.mrf.mxu3 }
  0xd4   : > { %v1247_v23 = vadd.f32 %v1246_v22, %v1233_v20 }
  0xe1   : > { %v1258_v17 = vpop.f32.mrf.mxu0 }
  0xe2   : > { %v1272_v18 = vpop.f32.mrf.mxu1  ;;  %v1259_v19 = vadd.f32 %v1258_v17, %v1245_v14 }
  0xe4   : > { %v1273_v21 = vadd.f32 %v1272_v18, %v1259_v19 }
  0xe6   : > { %1277 = vst [vmem:[#allocation2] sm:$0xff] %v1273_v21 }
  0xe9   : > { %v1260_v24 = vpop.f32.mrf.mxu0 }
  0xea   : > { %v1261_v25 = vadd.f32 %v1260_v24, %v1247_v23  ;;  %v1274_v26 = vpop.f32.mrf.mxu1 }
  0xec   : > { %v1275_v27 = vadd.f32 %v1274_v26, %v1261_v25 }
  0xee   : > { %1278 = vst [vmem:[#allocation2 + $0x8] sm:$0xff] %v1275_v27 }
  0xef PF: > { %v4265_v28 = vld [vmem:[#allocation2] sm:$0xff]  ;;  %v3904_v30 = vmov 128.0   ;;  %v3349_v45 = vld [vmem:[%s4038_s0 + $0xa8] sm:$0xf]  ;;  %v3741_v46 = vld [vmem:[%s4038_s0 + $0xb0] sm:$0xf0]  ;;  %s4988_s27 = scalar_lea.vmem %s4948_s5, %s4017_s20  ;;  %s4989_s19 = scalar_lea.vmem %s4949_s6, %s4017_s20 }
  0xf0   : > { %1283 = vadd.xlane.f32.xlu0 %v4265_v28  ;;  %3832 = vrcp.f32 %v3904_v30  ;;  %v3740_v47 = vld [vmem:[%s4038_s0 + $0xac] sm:$0xf]  ;;  %v3350_v48 = vor.u32 %v3741_v46, %v3349_v45  ;;  %v3351_v49 = vld [vmem:[%s4038_s0 + $0xb4] sm:$0xf0]  ;;  %v3357_v50 = vld [vmem:[%s4038_s0 + $0xb0] sm:$0xf]  ;;  %s4993_s22 = scalar_lea.vmem %s4953_s10, %s4017_s20  ;;  %s4994_s17 = scalar_lea.vmem %s4954_s11, %s4017_s20 }
  0xf1   : > { %v3742_v51 = vld [vmem:[%s4038_s0 + $0xb8] sm:$0xf0]  ;;  %v3354_v52 = vor.u32 %v3740_v47, %v3351_v49  ;;  %v3337_v54 = vld [vmem:[%s4038_s0 + $0x90] sm:$0xf]  ;;  %v3737_v56 = vld [vmem:[%s4038_s0 + $0x94] sm:$0xf]  ;;  %s4995_s3 = scalar_lea.vmem %s4955_s12, %s4017_s20 }
  0xf2   : > { %v3358_v53 = vor.u32 %v3742_v51, %v3357_v50  ;;  %1509 = vmatpush.bf16.msra.mxu0 %v3350_v48  ;;  %v3738_v55 = vld [vmem:[%s4038_s0 + $0x98] sm:$0xf0]  ;;  %v3339_v58 = vld [vmem:[%s4038_s0 + $0x9c] sm:$0xf0]  ;;  %v3345_v59 = vld [vmem:[%s4038_s0 + $0x98] sm:$0xf] }
  0xf3   : > { %1523 = vmatpush.bf16.msra.mxu1 %v3354_v52  ;;  %v3338_v57 = vor.u32 %v3738_v55, %v3337_v54  ;;  %v3739_v60 = vld [vmem:[%s4038_s0 + $0xa0] sm:$0xf0]  ;;  %v3342_v61 = vor.u32 %v3737_v56, %v3339_v58  ;;  %v3325_v63 = vld [vmem:[%s4038_s0 + $0x78] sm:$0xf]  ;;  %v3734_v1 = vld [vmem:[%s4038_s0 + $0x7c] sm:$0xf] }
  0xf4   : > { %1537 = vmatpush.bf16.msra.mxu2 %v3358_v53  ;;  %v3346_v62 = vor.u32 %v3739_v60, %v3345_v59  ;;  %v3735_v0 = vld [vmem:[%s4038_s0 + $0x80] sm:$0xf0]  ;;  %v3327_v3 = vld [vmem:[%s4038_s0 + $0x84] sm:$0xf0]  ;;  %v3333_v4 = vld [vmem:[%s4038_s0 + $0x80] sm:$0xf] }
  0xf5   : > { %v4268_v29 = vld [vmem:[#allocation2 + $0x8] sm:$0xff]  ;;  %v3326_v2 = vor.u32 %v3735_v0, %v3325_v63  ;;  %v3330_v6 = vor.u32 %v3734_v1, %v3327_v3  ;;  %v3313_v8 = vld [vmem:[%s4038_s0 + $0x60] sm:$0xf]  ;;  %v3731_v10 = vld [vmem:[%s4038_s0 + $0x64] sm:$0xf]  ;;  %s4990_s23 = sld [smem:[#allocation8_spill]] }
  0xf6   : > { %v3833_v31 = vpop.eup %3832  ;;  %1510 = vmatpush.bf16.msra.mxu0 %v3338_v57  ;;  %v3736_v5 = vld [vmem:[%s4038_s0 + $0x88] sm:$0xf0]  ;;  %v3315_v12 = vld [vmem:[%s4038_s0 + $0x6c] sm:$0xf0]  ;;  %v3321_v13 = vld [vmem:[%s4038_s0 + $0x68] sm:$0xf] }
  0xf7   : > { %v1288_v32 = vmul.f32 128.0, %v3833_v31  ;;  %vm1292_vm0 = vweird.f32 %v3833_v31  ;;  %1524 = vmatpush.bf16.msra.mxu1 %v3342_v61  ;;  %v3334_v7 = vor.u32 %v3736_v5, %v3333_v4  ;;  %v3732_v9 = vld [vmem:[%s4038_s0 + $0x68] sm:$0xf0]  ;;  %v3733_v14 = vld [vmem:[%s4038_s0 + $0x70] sm:$0xf0]  ;;  %v3318_v15 = vor.u32 %v3731_v10, %v3315_v12  ;;  %p3659_p5 = scmp.ne.s32.totalorder %s4011_s30, 1 }
  0xf8   : > { %1285 = vadd.xlane.f32.xlu0 %v4268_v29  ;;  %1538 = vmatpush.bf16.msra.mxu2 %v3346_v62  ;;  %v3314_v11 = vor.u32 %v3732_v9, %v3313_v8  ;;  %v3322_v16 = vor.u32 %v3733_v14, %v3321_v13  ;;  %v3301_v17 = vld [vmem:[%s4038_s0 + $0x48] sm:$0xf]  ;;  %v3729_v18 = vld [vmem:[%s4038_s0 + $0x50] sm:$0xf0]  ;;  %v3728_v19 = vld [vmem:[%s4038_s0 + $0x4c] sm:$0xf] }
  0xf9   : > { %v1289_v33 = vsub.f32 1.0, %v1288_v32  ;;  %v3302_v20 = vor.u32 %v3729_v18, %v3301_v17  ;;  %v3303_v21 = vld [vmem:[%s4038_s0 + $0x54] sm:$0xf0]  ;;  %v3309_v22 = vld [vmem:[%s4038_s0 + $0x50] sm:$0xf]  ;;  %vm1610_vm7 = vcmask 130048  }
  0xfa   : > { %1511 = vmatpush.bf16.msra.mxu0 %v3326_v2  ;;  %v3730_v23 = vld [vmem:[%s4038_s0 + $0x58] sm:$0xf0]  ;;  %v3306_v24 = vor.u32 %v3728_v19, %v3303_v21  ;;  %v3289_v26 = vld [vmem:[%s4038_s0 + $0x30] sm:$0xf]  ;;  %v3725_v30 = vld [vmem:[%s4038_s0 + $0x34] sm:$0xf] }
  0xfb   : > { %v1290_v34 = vmul.f32 %v3833_v31, %v1289_v33  ;;  %1525 = vmatpush.bf16.msra.mxu1 %v3330_v6  ;;  %v3310_v25 = vor.u32 %v3730_v23, %v3309_v22  ;;  %v3726_v27 = vld [vmem:[%s4038_s0 + $0x38] sm:$0xf0]  ;;  %v3291_v32 = vld [vmem:[%s4038_s0 + $0x3c] sm:$0xf0]  ;;  %v3297_v33 = vld [vmem:[%s4038_s0 + $0x38] sm:$0xf] }
  0xfc   : > { %1539 = vmatpush.bf16.msra.mxu2 %v3334_v7  ;;  %v3285_v45 = vld [vmem:[%s4038_s0 + $0x20] sm:$0xf]  ;;  %v3724_v46 = vld [vmem:[%s4038_s0 + $0x28] sm:$0xf0]  ;;  %v3719_v51 = vld [vmem:[%s4038_s0 + $0x4] sm:$0xf] }
  0xfd   : > { %v1291_v35 = vadd.f32 %v3833_v31, %v1290_v34  ;;  %v3727_v34 = vld [vmem:[%s4038_s0 + $0x40] sm:$0xf0]  ;;  %v3286_v48 = vor.u32 %v3724_v46, %v3285_v45  ;;  %v3265_v49 = vld [vmem:[%s4038_s0] sm:$0xf]  ;;  %v3720_v50 = vld [vmem:[%s4038_s0 + $0x8] sm:$0xf0] }
  0xfe   : > { %1512 = vmatpush.bf16.msra.mxu0 %v3314_v11  ;;  %v3266_v53 = vor.u32 %v3720_v50, %v3265_v49  ;;  %v3267_v54 = vld [vmem:[%s4038_s0 + $0xc] sm:$0xf0]  ;;  %v3273_v55 = vld [vmem:[%s4038_s0 + $0x8] sm:$0xf]  ;;  %v3721_v56 = vld [vmem:[%s4038_s0 + $0x10] sm:$0xf0] }
  0xff   : > { %v4271_v36 = vsel %vm1292_vm0, %v3833_v31, %v1291_v35  ;;  %1526 = vmatpush.bf16.msra.mxu1 %v3318_v15  ;;  %v3290_v31 = vor.u32 %v3726_v27, %v3289_v26  ;;  %v3294_v35 = vor.u32 %v3725_v30, %v3291_v32  ;;  %v3270_v58 = vor.u32 %v3719_v51, %v3267_v54  ;;  %v3826_v13 = vld [vmem:[%s4988_s27] ss:$0 sm:$0xff]  ;;  %v4363_v49 = vld [vmem:[%s4990_s23 + $0x18] sm:$0xff]  ;;  %v4368_v50 = vld [vmem:[%s4990_s23 + $0x10] sm:$0xff]  ;;  %s5009_s27 = sld [smem:[#allocation12_spill]] (!%p3659_p5) }
 0x100   : > { %1540 = vmatpush.bf16.msra.mxu2 %v3322_v16  ;;  %v3274_v59 = vor.u32 %v3721_v56, %v3273_v55  ;;  %v3827_v18 = vld [vmem:[%s4989_s19] ss:$0 sm:$0xff]  ;;  %v4375_v54 = vld [vmem:[%s4990_s23 + $0x28] sm:$0xff] }
 0x101   : > { %v4380_v55 = vld [vmem:[%s4990_s23 + $0x20] sm:$0xff] }
 0x102   : > { %1513 = vmatpush.bf16.msra.mxu0 %v3302_v20 }
 0x103   : > { %1527 = vmatpush.bf16.msra.mxu1 %v3306_v24  ;;  %v1373_v24 = vld [vmem:[%s4047_s24] sm:$0x7] }
 0x104   : > { %1541 = vmatpush.bf16.msra.mxu2 %v3310_v25  ;;  %v1376_v25 = vperm.slane %v1373_v24, 1  ;;  %v1375_v27 = vperm.slane %v1373_v24, 0 }
 0x106   : > { %1514 = vmatpush.bf16.msra.mxu0 %v3290_v31 }
 0x107   : > { %1528 = vmatpush.bf16.msra.mxu1 %v3294_v35  ;;  %v4351_v35 = vld [vmem:[%s4990_s23 + $0x8] sm:$0xff] }
 0x163   : > { %v1284_v37 = vpop.xlane.xlu0 %1283 }
 0x164   : > { %v1294_v38 = vmul.f32 %v4271_v36, %v1284_v37  ;;  %v3298_v37 = vor.u32 %v3727_v34, %v3297_v33 }
 0x166   : > { %v4275_v39 = vsub.f32 %v4265_v28, %v1294_v38  ;;  %1542 = vmatpush.bf16.msra.mxu2 %v3298_v37  ;;  %v3277_v38 = vld [vmem:[%s4038_s0 + $0x18] sm:$0xf] }
 0x168   : > { %v1298_v40 = vmul.f32 %v4275_v39, %v4275_v39 }
 0x16a   : > { %1300 = vadd.xlane.f32.xlu1 %v1298_v40  ;;  %v3723_v40 = vld [vmem:[%s4038_s0 + $0x20] sm:$0xf0]  ;;  %1543 = vmatpush.bf16.msra.mxu2 %v3286_v48 }
 0x16b   : > { %v1286_v41 = vpop.xlane.xlu0 %1285 }
 0x16c   : > { %v1295_v42 = vmul.f32 %v4271_v36, %v1286_v41  ;;  %v3722_v41 = vld [vmem:[%s4038_s0 + $0x1c] sm:$0xf] }
 0x16e   : > { %v4281_v43 = vsub.f32 %v4268_v29, %v1295_v42  ;;  %v3278_v42 = vor.u32 %v3723_v40, %v3277_v38  ;;  %1544 = vmatpush.bf16.msra.mxu2 %v3274_v59  ;;  %v1377_v38 = vperm.slane %v1373_v24, 2  ;;  %v4356_v40 = vld [vmem:[%s4990_s23] sm:$0xff]  ;;  %v4387_v59 = vld [vmem:[%s4990_s23 + $0x38] sm:$0xff] }
 0x170   : > { %v1299_v44 = vmul.f32 %v4281_v43, %v4281_v43  ;;  %1515 = vmatpush.bf16.msra.mxu0 %v3278_v42 }
 0x172   : > { %1302 = vadd.xlane.f32.xlu1 %v1299_v44  ;;  %v3279_v44 = vld [vmem:[%s4038_s0 + $0x24] sm:$0xf0]  ;;  %s4991_s0 = sld [smem:[#allocation7_spill]] }
 0x173   : > { %v3282_v47 = vor.u32 %v3722_v41, %v3279_v44 }
 0x174   : > { %1516 = vmatpush.bf16.msra.mxu0 %v3266_v53 }
 0x175   : > { %1529 = vmatpush.bf16.msra.mxu1 %v3282_v47 }
 0x178   : > { %s4992_s25 = smov %s4991_s0 }
 0x179   : > { %1530 = vmatpush.bf16.msra.mxu1 %v3270_v58 }
 0x1dd   : > { %v1301_v52 = vpop.xlane.xlu1 %1300 }
 0x1de   : > { %v1304_v57 = vmul.f32 %v1301_v52, %v4271_v36 }
 0x1e0   : > { %v1306_v60 = vadd.f32 1e-05, %v1304_v57 }
 0x1e2   : > { %3834 = vrsqrt.f32 %v1306_v60  ;;  %vm1314_vm2 = vweird.f32 %v1306_v60 }
 0x1e5   : > { %v1303_v61 = vpop.xlane.xlu1 %1302 }
 0x1e6   : > { %v1305_v62 = vmul.f32 %v1303_v61, %v4271_v36 }
 0x1e8   : > { %v3835_v63 = vpop.eup %3834  ;;  %v1307_v0 = vadd.f32 1e-05, %v1305_v62 }
 0x1e9   : > { %v1309_v1 = vmul.f32 %v3835_v63, %v1306_v60  ;;  %vm1315_vm1 = vweird.f32 %v3835_v63  ;;  %v4392_v60 = vld [vmem:[%s4990_s23 + $0x30] sm:$0xff] }
 0x1ea   : > { %3836 = vrsqrt.f32 %v1307_v0  ;;  %vm1316_vm3 = vmor %vm1314_vm2, %vm1315_vm1  ;;  %vm1324_vm5 = vweird.f32 %v1307_v0 }
 0x1eb   : > { %v1310_v2 = vmul.f32 %v3835_v63, %v1309_v1 }
 0x1ed   : > { %v1311_v3 = vmul.f32 0.5, %v1310_v2 }
 0x1ef   : > { %v1312_v4 = vsub.f32 1.5, %v1311_v3 }
 0x1f0   : > { %v3837_v5 = vpop.eup %3836 }
 0x1f1   : > { %v1313_v6 = vmul.f32 %v3835_v63, %v1312_v4  ;;  %v1319_v7 = vmul.f32 %v3837_v5, %v1307_v0  ;;  %vm1325_vm4 = vweird.f32 %v3837_v5  ;;  %v1573_v0 = vld [vmem:[%s4991_s0] sm:$0xff]  ;;  %v1574_v4 = vld [vmem:[%s4992_s25 + $0x8] sm:$0xff]  ;;  %s5008_s0 = scalar_lea.vmem %s4959_s16, %s4017_s20 }
 0x1f2   : > { %vm1326_vm6 = vmor %vm1324_vm5, %vm1325_vm4 }
 0x1f3   : > { %v1320_v8 = vmul.f32 %v3837_v5, %v1319_v7  ;;  %v1317_v9 = vsel %vm1316_vm3, %v3835_v63, %v1313_v6 }
 0x1f4   : > { %v1328_v12 = vmul.f32 %v1317_v9, %v4275_v39 }
 0x1f5   : > { %v1321_v10 = vmul.f32 0.5, %v1320_v8  ;;  %v1575_v8 = vld [vmem:[%s4992_s25 + $0x10] sm:$0xff] }
 0x1f6   : > { %v1333_v17 = vmul.f32 %v3826_v13, %v1328_v12  ;;  %v1576_v12 = vld [vmem:[%s4992_s25 + $0x18] sm:$0xff] }
 0x1f7   : > { %v1322_v11 = vsub.f32 1.5, %v1321_v10 }
 0x1f8   : > { %v1338_v39 = vadd.f32 %v3827_v18, %v1333_v17 }
 0x1f9   : > { %v1323_v14 = vmul.f32 %v3837_v5, %v1322_v11 }
 0x1fb   : > { %v1327_v15 = vsel %vm1326_vm6, %v3837_v5, %v1323_v14 }
 0x1fc   : > { %v1329_v16 = vmul.f32 %v1327_v15, %v4281_v43 }
 0x1fe   : > { %v1334_v19 = vmul.f32 %v3826_v13, %v1329_v16  ;;  %v1577_v16 = vld [vmem:[%s4992_s25 + $0x20] sm:$0xff] }
 0x200   : > { %v1339_v20 = vadd.f32 %v3827_v18, %v1334_v19 }
 0x202   : > { %v1372_v21 = vpack.c.bf16 %v1339_v20, %v1338_v39  ;;  %v1578_v39 = vld [vmem:[%s4992_s25 + $0x28] sm:$0xff] }
 0x204   : > { %1517 = vmatmul.bf16.vlgmr.msra.gmra.mxu0 %v1372_v21  ;;  %1531 = vmatmul.bf16.vlgmr.msra.gmra.mxu1 %v1372_v21 }
 0x205   : > { %1545 = vmatmul.bf16.vlgmr.msra.gmra.mxu2 %v1372_v21 }
 0x281   : > { %v1518_v22 = vpop.f32.mrf.mxu0  ;;  %v1532_v23 = vpop.f32.mrf.mxu1 }
 0x282   : > { %v1533_v31 = vadd.f32 %v1532_v23, %v1376_v25  ;;  %v1519_v37 = vadd.f32 %v1518_v22, %v1375_v27  ;;  %v1579_v23 = vld [vmem:[%s4992_s25 + $0x30] sm:$0xff] }
 0x284   : > { %v1561_v46 = vmul.f32 %v4356_v40, %v1519_v37  ;;  %v1563_v52 = vmul.f32 %v4368_v50, %v1519_v37  ;;  %v1565_v57 = vmul.f32 %v4380_v55, %v1519_v37  ;;  %v1567_v62 = vmul.f32 %v4392_v60, %v1519_v37 }
 0x288   : > { %v1546_v26 = vpop.f32.mrf.mxu2 }
 0x289   : > { %v1520_v43 = vpop.f32.mrf.mxu0  ;;  %v1534_v30 = vpop.f32.mrf.mxu1  ;;  %v1547_v44 = vadd.f32 %v1546_v26, %v1377_v38 }
 0x28a   : > { %v1535_v32 = vadd.f32 %v1534_v30, %v1376_v25  ;;  %v1521_v33 = vadd.f32 %v1520_v43, %v1375_v27  ;;  %v1580_v27 = vld [vmem:[%s4992_s25 + $0x38] sm:$0xff] }
 0x28c   : > { %v1551_v34 = vpack.c.bf16 %v1535_v32, %v1533_v31  ;;  %v1562_v41 = vmul.f32 %v4351_v35, %v1521_v33  ;;  %v1564_v51 = vmul.f32 %v4363_v49, %v1521_v33  ;;  %v1566_v56 = vmul.f32 %v4375_v54, %v1521_v33 }
 0x28d   : > { %v1568_v61 = vmul.f32 %v4387_v59, %v1521_v33 }
 0x28e   : > { %1588 = vmatpush.bf16.xpose.msra.mxu3 %v1551_v34  ;;  %v1569_v48 = vpack.c.bf16 %v1562_v41, %v1561_v46  ;;  %v1570_v53 = vpack.c.bf16 %v1564_v51, %v1563_v52  ;;  %v1571_v58 = vpack.c.bf16 %v1566_v56, %v1565_v57 }
 0x28f   : > { %v1572_v63 = vpack.c.bf16 %v1568_v61, %v1567_v62 }
 0x290   : > { %v1548_v42 = vpop.f32.mrf.mxu2 }
 0x291   : > { %v1549_v45 = vadd.f32 %v1548_v42, %v1377_v38 }
 0x293   : > { %v1552_v47 = vpack.c.bf16 %v1549_v45, %v1547_v44 }
 0x295   : > { %1722 = vmatpush.bf16.msrb.mxu0 %v1552_v47  ;;  %1589 = vmatmul.bf16.vlgmr.msra.gmra.mxu3 %v1569_v48 }
 0x2a5   : > { %1594 = vmatmul.bf16.gmra.mxu3 %v1570_v53 }
 0x2b5   : > { %1599 = vmatmul.bf16.gmra.mxu3 %v1571_v58 }
 0x2c5   : > { %1604 = vmatmul.bf16.gmra.mxu3 %v1572_v63 }
 0x318   : > { %v1590_v1 = vpop.f32.mrf.mxu3 }
 0x319   : > { %v1591_v2 = vadd.f32 %v1590_v1, %v1573_v0 }
 0x31b   : > { %v1611_v3 = vsel %vm1610_vm7, %v1591_v2, -inf }
 0x31c   : > { %1612 = vmax.xlane.f32.xlu2 %v1611_v3 }
 0x320   : > { %v1592_v5 = vpop.f32.mrf.mxu3 }
 0x321   : > { %v1593_v6 = vadd.f32 %v1592_v5, %v1574_v4 }
 0x323   : > { %v1614_v7 = vsel %vm1610_vm7, %v1593_v6, -inf }
 0x324   : > { %1615 = vmax.xlane.f32.xlu2 %v1614_v7 }
 0x328   : > { %v1595_v9 = vpop.f32.mrf.mxu3 }
 0x329   : > { %v1596_v10 = vadd.f32 %v1595_v9, %v1575_v8 }
 0x32b   : > { %v1617_v11 = vsel %vm1610_vm7, %v1596_v10, -inf }
 0x32c   : > { %1618 = vmax.xlane.f32.xlu0 %v1617_v11 }
 0x330   : > { %v1597_v13 = vpop.f32.mrf.mxu3 }
 0x331   : > { %v1598_v14 = vadd.f32 %v1597_v13, %v1576_v12 }
 0x333   : > { %v1620_v15 = vsel %vm1610_vm7, %v1598_v14, -inf }
 0x334   : > { %1621 = vmax.xlane.f32.xlu1 %v1620_v15 }
 0x338   : > { %v1600_v17 = vpop.f32.mrf.mxu3 }
 0x339   : > { %v1601_v18 = vadd.f32 %v1600_v17, %v1577_v16 }
 0x33b   : > { %v1623_v19 = vsel %vm1610_vm7, %v1601_v18, -inf }
 0x33c   : > { %1624 = vmax.xlane.f32.xlu2 %v1623_v19 }
 0x340   : > { %v1602_v20 = vpop.f32.mrf.mxu3 }
 0x341   : > { %v1603_v21 = vadd.f32 %v1602_v20, %v1578_v39 }
 0x343   : > { %v1626_v22 = vsel %vm1610_vm7, %v1603_v21, -inf }
 0x344   : > { %1627 = vmax.xlane.f32.xlu0 %v1626_v22 }
 0x348   : > { %v1605_v24 = vpop.f32.mrf.mxu3 }
 0x349   : > { %v1606_v25 = vadd.f32 %v1605_v24, %v1579_v23 }
 0x34b   : > { %v1629_v26 = vsel %vm1610_vm7, %v1606_v25, -inf }
 0x34c   : > { %1630 = vmax.xlane.f32.xlu1 %v1629_v26 }
 0x350   : > { %v1607_v43 = vpop.f32.mrf.mxu3 }
 0x351   : > { %v1608_v30 = vadd.f32 %v1607_v43, %v1580_v27 }
 0x353   : > { %v1632_v31 = vsel %vm1610_vm7, %v1608_v30, -inf }
 0x354   : > { %1633 = vmax.xlane.f32.xlu2 %v1632_v31 }
 0x38f   : > { %v1613_v32 = vpop.xlane.xlu2 %1612 }
 0x390   : > { %v1635_v33 = vsub.f32 %v1591_v2, %v1613_v32 }
 0x392   : > { %v1643_v34 = vmul.f32 1.442695, %v1635_v33 }
 0x394   : > { %3838 = vpow2.f32 %v1643_v34 }
 0x397   : > { %v1616_v37 = vpop.xlane.xlu2 %1615 }
 0x398   : > { %v1636_v38 = vsub.f32 %v1593_v6, %v1616_v37 }
 0x39a   : > { %v3839_v41 = vpop.eup %3838  ;;  %v1645_v42 = vmul.f32 1.442695, %v1636_v38 }
 0x39b   : > { %v1659_v44 = vsel %vm1610_vm7, %v3839_v41, 0.0 }
 0x39c   : > { %3840 = vpow2.f32 %v1645_v42  ;;  %1660 = vadd.xlane.f32.xlu0 %v1659_v44 }
 0x39f   : > { %v1619_v45 = vpop.xlane.xlu0 %1618 }
 0x3a0   : > { %v1637_v46 = vsub.f32 %v1596_v10, %v1619_v45 }
 0x3a2   : > { %v3841_v47 = vpop.eup %3840  ;;  %v1647_v48 = vmul.f32 1.442695, %v1637_v46 }
 0x3a3   : > { %v1662_v51 = vsel %vm1610_vm7, %v3841_v47, 0.0 }
 0x3a4   : > { %3842 = vpow2.f32 %v1647_v48  ;;  %1663 = vadd.xlane.f32.xlu1 %v1662_v51 }
 0x3a7   : > { %v1622_v52 = vpop.xlane.xlu1 %1621 }
 0x3a8   : > { %v1638_v53 = vsub.f32 %v1598_v14, %v1622_v52 }
 0x3aa   : > { %v3843_v56 = vpop.eup %3842  ;;  %v1649_v57 = vmul.f32 1.442695, %v1638_v53 }
 0x3ab   : > { %v1665_v58 = vsel %vm1610_vm7, %v3843_v56, 0.0 }
 0x3ac   : > { %3844 = vpow2.f32 %v1649_v57  ;;  %1666 = vadd.xlane.f32.xlu2 %v1665_v58  ;;  %v3749_v58 = vld [vmem:[%s4033_s29 + $0x30] sm:$0xff] }
 0x3af   : > { %v1625_v61 = vpop.xlane.xlu2 %1624 }
 0x3b0   : > { %v1639_v62 = vsub.f32 %v1601_v18, %v1625_v61  ;;  %v3748_v61 = vld [vmem:[%s4033_s29 + $0x28] sm:$0xff] }
 0x3b2   : > { %v3845_v63 = vpop.eup %3844  ;;  %v1651_v0 = vmul.f32 1.442695, %v1639_v62 }
 0x3b3   : > { %v1668_v1 = vsel %vm1610_vm7, %v3845_v63, 0.0 }
 0x3b4   : > { %3846 = vpow2.f32 %v1651_v0  ;;  %1669 = vadd.xlane.f32.xlu0 %v1668_v1  ;;  %v3746_v0 = vld [vmem:[%s4033_s29 + $0x18] sm:$0xff] }
 0x3b7   : > { %v1628_v2 = vpop.xlane.xlu0 %1627 }
 0x3b8   : > { %v1640_v3 = vsub.f32 %v1603_v21, %v1628_v2  ;;  %v3745_v2 = vld [vmem:[%s4033_s29 + $0x10] sm:$0xff] }
 0x3ba   : > { %v3847_v4 = vpop.eup %3846  ;;  %v1653_v5 = vmul.f32 1.442695, %v1640_v3  ;;  %v3744_v3 = vld [vmem:[%s4033_s29 + $0x8] sm:$0xff] }
 0x3bb   : > { %v1671_v6 = vsel %vm1610_vm7, %v3847_v4, 0.0 }
 0x3bc   : > { %3848 = vpow2.f32 %v1653_v5  ;;  %1672 = vadd.xlane.f32.xlu1 %v1671_v6  ;;  %v3743_v5 = vld [vmem:[%s4033_s29] sm:$0xff] }
 0x3bf   : > { %v1631_v7 = vpop.xlane.xlu1 %1630 }
 0x3c0   : > { %v1641_v8 = vsub.f32 %v1606_v25, %v1631_v7 }
 0x3c2   : > { %v3849_v9 = vpop.eup %3848  ;;  %v1655_v10 = vmul.f32 1.442695, %v1641_v8 }
 0x3c3   : > { %v1674_v11 = vsel %vm1610_vm7, %v3849_v9, 0.0 }
 0x3c4   : > { %3850 = vpow2.f32 %v1655_v10  ;;  %1675 = vadd.xlane.f32.xlu2 %v1674_v11 }
 0x3c7   : > { %v1634_v12 = vpop.xlane.xlu2 %1633 }
 0x3c8   : > { %v1642_v13 = vsub.f32 %v1608_v30, %v1634_v12 }
 0x3ca   : > { %v3851_v14 = vpop.eup %3850  ;;  %v1657_v15 = vmul.f32 1.442695, %v1642_v13 }
 0x3cb   : > { %v1677_v16 = vsel %vm1610_vm7, %v3851_v14, 0.0 }
 0x3cc   : > { %3852 = vpow2.f32 %v1657_v15  ;;  %1678 = vadd.xlane.f32.xlu0 %v1677_v16 }
 0x3d2   : > { %v3853_v17 = vpop.eup %3852 }
 0x3d3   : > { %v1680_v18 = vsel %vm1610_vm7, %v3853_v17, 0.0 }
 0x3d4   : > { %1681 = vadd.xlane.f32.xlu1 %v1680_v18 }
 0x40f   : > { %v1661_v19 = vpop.xlane.xlu0 %1660 }
 0x410   : > { %3854 = vrcp.f32 %v1661_v19 }
 0x416   : > { %v3855_v20 = vpop.eup %3854 }
 0x417   : > { %v1664_v39 = vpop.xlane.xlu1 %1663  ;;  %v1691_v22 = vmul.f32 %v3855_v20, %v3839_v41 }
 0x418   : > { %3856 = vrcp.f32 %v1664_v39 }
 0x41e   : > { %v3857_v21 = vpop.eup %3856 }
 0x41f   : > { %v1692_v23 = vmul.f32 %v3857_v21, %v3841_v47  ;;  %v1667_v25 = vpop.xlane.xlu2 %1666 }
 0x420   : > { %3858 = vrcp.f32 %v1667_v25  ;;  %v3509_v25 = vld [vmem:[%s4061_s7 + $0xe0] sm:$0xf] }
 0x421   : > { %v1699_v24 = vpack.c.bf16 %v1692_v23, %v1691_v22  ;;  %v3779_v23 = vld [vmem:[%s4061_s7 + $0xe4] sm:$0xf] }
 0x423   : > { %3359 = vmatmul.msk.bf16.vlgmr.msrb.gmra.mxu0 %vm1610_vm7, %v1699_v24  ;;  %v3511_v24 = vld [vmem:[%s4061_s7 + $0xf0] sm:$0xf0] }
 0x426   : > { %v3859_v27 = vpop.eup %3858 }
 0x427   : > { %v1670_v26 = vpop.xlane.xlu0 %1669  ;;  %v1693_v30 = vmul.f32 %v3859_v27, %v3843_v56  ;;  %v3750_v56 = vld [vmem:[%s4033_s29 + $0x38] sm:$0xff]  ;;  %v3781_v27 = vld [vmem:[%s4061_s7 + $0xec] sm:$0xf0] }
 0x428   : > { %3860 = vrcp.f32 %v1670_v26  ;;  %1823 = vmatpush.bf16.msrb.mxu1 %v3750_v56  ;;  %v3514_v26 = vor.u32 %v3779_v23, %v3511_v24  ;;  %v3780_v23 = vld [vmem:[%s4061_s7 + $0xec] sm:$0xf]  ;;  %v3519_v24 = vld [vmem:[%s4061_s7 + $0xf8] sm:$0xf0] }
 0x42a   : > { %2114 = vmatpush.bf16.msrb.mxu3 %v3514_v26  ;;  %v3522_v26 = vor.u32 %v3780_v23, %v3519_v24 }
 0x42c   : > { %1824 = vmatpush.bf16.msrb.mxu1 %v3749_v58  ;;  %v3765_v58 = vld [vmem:[%s4061_s7 + $0x6c] sm:$0xf0] }
 0x42e   : > { %v3861_v43 = vpop.eup %3860 }
 0x42f   : > { %v1694_v31 = vmul.f32 %v3861_v43, %v3845_v63  ;;  %v1673_v33 = vpop.xlane.xlu1 %1672  ;;  %v3747_v63 = vld [vmem:[%s4033_s29 + $0x20] sm:$0xff]  ;;  %s5010_s29 = sld [smem:[#allocation13_spill]] (!%p3659_p5) }
 0x430   : > { %3862 = vrcp.f32 %v1673_v33  ;;  %1825 = vmatpush.bf16.msrb.mxu1 %v3748_v61  ;;  %v3493_v43 = vld [vmem:[%s4061_s7 + $0xc0] sm:$0xf]  ;;  %v3775_v61 = vld [vmem:[%s4061_s7 + $0xc4] sm:$0xf] }
 0x431   : > { %v1700_v32 = vpack.c.bf16 %v1694_v31, %v1693_v30  ;;  %v3777_v30 = vld [vmem:[%s4061_s7 + $0xcc] sm:$0xf0] }
 0x432   : > { %v3494_v31 = vor.u32 %v3777_v30, %v3493_v43  ;;  %v3431_v43 = vld [vmem:[%s4061_s7 + $0x50] sm:$0xf0]  ;;  %v3437_v30 = vld [vmem:[%s4061_s7 + $0x48] sm:$0xf] }
 0x433   : > { %3360 = vmatmul.msk.bf16.gmra.mxu0 %vm1610_vm7, %v1700_v32 }
 0x434   : > { %1826 = vmatpush.bf16.msrb.mxu1 %v3747_v63 }
 0x436   : > { %v3863_v37 = vpop.eup %3862 }
 0x437   : > { %v1676_v34 = vpop.xlane.xlu2 %1675  ;;  %v1695_v41 = vmul.f32 %v3863_v37, %v3847_v4 }
 0x438   : > { %3864 = vrcp.f32 %v1676_v34  ;;  %1827 = vmatpush.bf16.msrb.mxu1 %v3746_v0  ;;  %v3501_v0 = vld [vmem:[%s4061_s7 + $0xc8] sm:$0xf] }
 0x43c   : > { %1828 = vmatpush.bf16.msrb.mxu1 %v3745_v2  ;;  %v3778_v2 = vld [vmem:[%s4061_s7 + $0xd4] sm:$0xf0] }
 0x43e   : > { %v3865_v38 = vpop.eup %3864 }
 0x43f   : > { %v1696_v42 = vmul.f32 %v3865_v38, %v3849_v9  ;;  %v1679_v45 = vpop.xlane.xlu0 %1678 }
 0x440   : > { %3866 = vrcp.f32 %v1679_v45  ;;  %1829 = vmatpush.bf16.msrb.mxu1 %v3744_v3  ;;  %v3773_v45 = vld [vmem:[%s4061_s7 + $0xac] sm:$0xf0]  ;;  %v3502_v3 = vor.u32 %v3778_v2, %v3501_v0  ;;  %v3768_v0 = vld [vmem:[%s4061_s7 + $0x8c] sm:$0xf] }
 0x441   : > { %v1701_v44 = vpack.c.bf16 %v1696_v42, %v1695_v41 }
 0x443   : > { %3361 = vmatmul.msk.bf16.gmra.mxu0 %vm1610_vm7, %v1701_v44  ;;  %v3477_v44 = vld [vmem:[%s4061_s7 + $0xa0] sm:$0xf] }
 0x444   : > { %1830 = vmatpush.bf16.msrb.mxu1 %v3743_v5  ;;  %v3761_v5 = vld [vmem:[%s4061_s7 + $0x4c] sm:$0xf0] }
 0x446   : > { %v3867_v47 = vpop.eup %3866 }
 0x447   : > { %v1682_v46 = vpop.xlane.xlu1 %1681  ;;  %v1697_v51 = vmul.f32 %v3867_v47, %v3851_v14  ;;  %v3461_v47 = vld [vmem:[%s4061_s7 + $0x80] sm:$0xf] }
 0x448   : > { %3868 = vrcp.f32 %v1682_v46  ;;  %v3478_v46 = vor.u32 %v3773_v45, %v3477_v44  ;;  %v3421_v44 = vld [vmem:[%s4061_s7 + $0x28] sm:$0xf] }
 0x44e   : > { %v3869_v48 = vpop.eup %3868 }
 0x44f   : > { %v1698_v52 = vmul.f32 %v3869_v48, %v3853_v17  ;;  %v3769_v48 = vld [vmem:[%s4061_s7 + $0x8c] sm:$0xf0] }
 0x451   : > { %v1702_v53 = vpack.c.bf16 %v1698_v52, %v1697_v51  ;;  %v3462_v51 = vor.u32 %v3769_v48, %v3461_v47  ;;  %v3517_v52 = vld [vmem:[%s4061_s7 + $0xe8] sm:$0xf]  ;;  %v3772_v47 = vld [vmem:[%s4061_s7 + $0xac] sm:$0xf]  ;;  %v3487_v48 = vld [vmem:[%s4061_s7 + $0xb8] sm:$0xf0] }
 0x453   : > { %3362 = vmatmul.msk.bf16.gmra.mxu0 %vm1610_vm7, %v1702_v53  ;;  %v3782_v53 = vld [vmem:[%s4061_s7 + $0xf4] sm:$0xf0] }
 0x454   : > { %v3518_v56 = vor.u32 %v3782_v53, %v3517_v52  ;;  %v3490_v53 = vor.u32 %v3772_v47, %v3487_v48 }
 0x456   : > { %2128 = vmatpush.bf16.msra.mxu1 %v3518_v56  ;;  %v3751_v56 = vld [vmem:[%s4061_s7 + $0x4] sm:$0xf] }
 0x45a   : > { %2129 = vmatpush.bf16.msra.mxu1 %v3502_v3 }
 0x4a0   : > { %v1724_v57 = vpop.f32.mrf.mxu0 }
 0x4a1   : > { %v1744_v11 = vmul.f32 %v1724_v57, %v4356_v40  ;;  %v3445_v57 = vld [vmem:[%s4061_s7 + $0x60] sm:$0xf] }
 0x4a2   : > { %v3446_v63 = vor.u32 %v3765_v58, %v3445_v57  ;;  %v3399_v57 = vld [vmem:[%s4061_s7 + $0x10] sm:$0xf0]  ;;  %v3405_v58 = vld [vmem:[%s4061_s7 + $0x8] sm:$0xf] }
 0x4a8   : > { %v1726_v62 = vpop.f32.mrf.mxu0 }
 0x4a9   : > { %v1745_v12 = vmul.f32 %v1726_v62, %v4351_v35  ;;  %v3495_v62 = vld [vmem:[%s4061_s7 + $0xd0] sm:$0xf0] }
 0x4b0   : > { %v1729_v1 = vpop.f32.mrf.mxu0 }
 0x4b1   : > { %v1746_v9 = vmul.f32 %v1729_v1, %v4368_v50  ;;  %v3498_v1 = vor.u32 %v3775_v61, %v3495_v62  ;;  %v3402_v62 = vor.u32 %v3751_v56, %v3399_v57 }
 0x4b3   : > { %v1752_v15 = vadd.f32 %v1746_v9, %v1744_v11  ;;  %2115 = vmatpush.bf16.msrb.mxu3 %v3498_v1  ;;  %v3485_v9 = vld [vmem:[%s4061_s7 + $0xa8] sm:$0xf]  ;;  %v3774_v11 = vld [vmem:[%s4061_s7 + $0xb4] sm:$0xf0]  ;;  %v3471_v1 = vld [vmem:[%s4061_s7 + $0x98] sm:$0xf0] }
 0x4b4   : > { %v3474_v3 = vor.u32 %v3768_v0, %v3471_v1 }
 0x4b8   : > { %v1731_v4 = vpop.f32.mrf.mxu0 }
 0x4b9   : > { %v1747_v10 = vmul.f32 %v1731_v4, %v4363_v49  ;;  %v3429_v4 = vld [vmem:[%s4061_s7 + $0x40] sm:$0xf] }
 0x4bb   : > { %v1753_v16 = vadd.f32 %v1747_v10, %v1745_v12  ;;  %v3486_v12 = vor.u32 %v3774_v11, %v3485_v9  ;;  %v3760_v9 = vld [vmem:[%s4061_s7 + $0x4c] sm:$0xf] }
 0x4bd   : > { %2130 = vmatpush.bf16.msra.mxu1 %v3486_v12 }
 0x4c0   : > { %v1734_v6 = vpop.f32.mrf.mxu0 }
 0x4c1   : > { %v1748_v13 = vmul.f32 %v1734_v6, %v4380_v55  ;;  %v3771_v6 = vld [vmem:[%s4061_s7 + $0xa4] sm:$0xf] }
 0x4c3   : > { %v1754_v19 = vadd.f32 %v1752_v15, %v1748_v13  ;;  %v3413_v13 = vld [vmem:[%s4061_s7 + $0x20] sm:$0xf]  ;;  %v3767_v15 = vld [vmem:[%s4061_s7 + $0x84] sm:$0xf] }
 0x4c8   : > { %v1736_v7 = vpop.f32.mrf.mxu0 }
 0x4c9   : > { %v1749_v14 = vmul.f32 %v1736_v7, %v4375_v54  ;;  %v3828_v54 = vld [vmem:[%s4993_s22] ss:$0 sm:$0xff]  ;;  %v3479_v7 = vld [vmem:[%s4061_s7 + $0xb0] sm:$0xf0] }
 0x4ca   : > { %v3482_v10 = vor.u32 %v3771_v6, %v3479_v7  ;;  %v3455_v6 = vld [vmem:[%s4061_s7 + $0x78] sm:$0xf0] }
 0x4cb   : > { %v1755_v39 = vadd.f32 %v1753_v16, %v1749_v14  ;;  %v3757_v14 = vld [vmem:[%s4061_s7 + $0x2c] sm:$0xf0]  ;;  %v3463_v16 = vld [vmem:[%s4061_s7 + $0x90] sm:$0xf0] }
 0x4cc   : > { %2116 = vmatpush.bf16.msrb.mxu3 %v3482_v10  ;;  %v3439_v10 = vld [vmem:[%s4061_s7 + $0x58] sm:$0xf0] }
 0x4cd   : > { %v3442_v12 = vor.u32 %v3760_v9, %v3439_v10 }
 0x4d0   : > { %v1739_v8 = vpop.f32.mrf.mxu0 }
 0x4d1   : > { %v1750_v17 = vmul.f32 %v1739_v8, %v4392_v60  ;;  %v3430_v8 = vor.u32 %v3761_v5, %v3429_v4  ;;  %v3764_v5 = vld [vmem:[%s4061_s7 + $0x6c] sm:$0xf] }
 0x4d2   : > { %v3458_v7 = vor.u32 %v3764_v5, %v3455_v6 }
 0x4d3   : > { %v1756_v50 = vadd.f32 %v1754_v19, %v1750_v17  ;;  %v3414_v17 = vor.u32 %v3757_v14, %v3413_v13  ;;  %v3466_v19 = vor.u32 %v3767_v15, %v3463_v16  ;;  %v3756_v15 = vld [vmem:[%s4061_s7 + $0x2c] sm:$0xf]  ;;  %v3423_v16 = vld [vmem:[%s4061_s7 + $0x38] sm:$0xf0] }
 0x4d5   : > { %2117 = vmatpush.bf16.msrb.mxu3 %v3466_v19  ;;  %v3426_v19 = vor.u32 %v3756_v15, %v3423_v16 }
 0x4d8   : > { %v1741_v18 = vpop.f32.mrf.mxu0 }
 0x4d9   : > { %v1751_v49 = vmul.f32 %v1741_v18, %v4387_v59  ;;  %v3469_v18 = vld [vmem:[%s4061_s7 + $0x88] sm:$0xf] }
 0x4db   : > { %v1757_v40 = vadd.f32 %v1755_v39, %v1751_v49  ;;  %v3770_v39 = vld [vmem:[%s4061_s7 + $0x94] sm:$0xf0] }
 0x4dc   : > { %v3470_v49 = vor.u32 %v3770_v39, %v3469_v18  ;;  %v3752_v39 = vld [vmem:[%s4061_s7 + $0xc] sm:$0xf] }
 0x4dd   : > { %v1774_v35 = vpack.c.bf16 %v1757_v40, %v1756_v50  ;;  %v3397_v50 = vld [vmem:[%s4061_s7] sm:$0xf]  ;;  %v3753_v40 = vld [vmem:[%s4061_s7 + $0xc] sm:$0xf0] }
 0x4de   : > { %2131 = vmatpush.bf16.msra.mxu1 %v3470_v49  ;;  %v3407_v49 = vld [vmem:[%s4061_s7 + $0x18] sm:$0xf0] }
 0x4df   : > { %1831 = vmatmul.bf16.vlgmr.msrb.gmra.mxu1 %v1774_v35  ;;  %v3398_v35 = vor.u32 %v3753_v40, %v3397_v50 }
 0x55c   : > { %v1832_v55 = vpop.f32.mrf.mxu1 }
 0x55d   : > { %v1837_v60 = vadd.f32 %v1832_v55, %v4265_v28  ;;  %v3510_v28 = vor.u32 %v3781_v27, %v3509_v25  ;;  %v3447_v55 = vld [vmem:[%s4061_s7 + $0x70] sm:$0xf0]  ;;  %v3759_v27 = vld [vmem:[%s4061_s7 + $0x44] sm:$0xf] }
 0x55f   : > { %v4462_v20 = vadd.f32 %v3828_v54, %v1837_v60  ;;  %2100 = vmatpush.bf16.msrb.mxu2 %v3510_v28  ;;  %v3453_v60 = vld [vmem:[%s4061_s7 + $0x68] sm:$0xf]  ;;  %v3434_v28 = vor.u32 %v3759_v27, %v3431_v43 }
 0x561   : > { %1847 = vadd.xlane.f32.xlu2 %v4462_v20 }
 0x563   : > { %2101 = vmatpush.bf16.msrb.mxu2 %v3494_v31  ;;  %v3762_v31 = vld [vmem:[%s4061_s7 + $0x54] sm:$0xf0] }
 0x564   : > { %v1834_v59 = vpop.f32.mrf.mxu1 }
 0x565   : > { %v1838_v21 = vadd.f32 %v1834_v59, %v4268_v29 }
 0x567   : > { %v4466_v22 = vadd.f32 %v3828_v54, %v1838_v21  ;;  %2102 = vmatpush.bf16.msrb.mxu2 %v3478_v46  ;;  %v3763_v54 = vld [vmem:[%s4061_s7 + $0x64] sm:$0xf]  ;;  %v3766_v21 = vld [vmem:[%s4061_s7 + $0x74] sm:$0xf0] }
 0x568   : > { %v3450_v59 = vor.u32 %v3763_v54, %v3447_v55  ;;  %v3454_v25 = vor.u32 %v3766_v21, %v3453_v60  ;;  %v3758_v46 = vld [vmem:[%s4061_s7 + $0x34] sm:$0xf0] }
 0x569   : > { %1849 = vadd.xlane.f32.xlu0 %v4466_v22  ;;  %v3422_v52 = vor.u32 %v3758_v46, %v3421_v44 }
 0x56a   : > { %2118 = vmatpush.bf16.msrb.mxu3 %v3450_v59  ;;  %2132 = vmatpush.bf16.msra.mxu1 %v3454_v25 }
 0x56b   : > { %2103 = vmatpush.bf16.msrb.mxu2 %v3462_v51 }
 0x56e   : > { %2119 = vmatpush.bf16.msrb.mxu3 %v3434_v28 }
 0x56f   : > { %2104 = vmatpush.bf16.msrb.mxu2 %v3446_v63  ;;  %v3754_v63 = vld [vmem:[%s4061_s7 + $0x14] sm:$0xf0] }
 0x570   : > { %v3406_v2 = vor.u32 %v3754_v63, %v3405_v58 }
 0x573   : > { %2105 = vmatpush.bf16.msrb.mxu2 %v3430_v8 }
 0x577   : > { %2106 = vmatpush.bf16.msrb.mxu2 %v3414_v17 }
 0x57b   : > { %2107 = vmatpush.bf16.msrb.mxu2 %v3398_v35  ;;  %v3410_v35 = vor.u32 %v3752_v39, %v3407_v49 }
 0x57f   : > { %2142 = vmatpush.bf16.msra.mxu2 %v3522_v26  ;;  %v3829_v26 = vld [vmem:[%s4994_s17] ss:$0 sm:$0xff] }
 0x5d4   : > { %v1848_v29 = vpop.xlane.xlu2 %1847 }
 0x5d5   : > { %v1851_v32 = vmul.f32 %v1848_v29, %v4271_v36  ;;  %v3776_v29 = vld [vmem:[%s4061_s7 + $0xcc] sm:$0xf] }
 0x5d7   : > { %v4477_v33 = vsub.f32 %v4462_v20, %v1851_v32  ;;  %v3503_v32 = vld [vmem:[%s4061_s7 + $0xd8] sm:$0xf0] }
 0x5d9   : > { %v1855_v34 = vmul.f32 %v4477_v33, %v4477_v33 }
 0x5db   : > { %1857 = vadd.xlane.f32.xlu1 %v1855_v34  ;;  %v3438_v34 = vor.u32 %v3762_v31, %v3437_v30  ;;  %v3830_v31 = vld [vmem:[%s4995_s3] ss:$0 sm:$0xff] }
 0x5dc   : > { %v1850_v37 = vpop.xlane.xlu0 %1849 }
 0x5dd   : > { %v1852_v38 = vmul.f32 %v1850_v37, %v4271_v36  ;;  %v3506_v37 = vor.u32 %v3776_v29, %v3503_v32  ;;  %2133 = vmatpush.bf16.msra.mxu1 %v3438_v34 }
 0x5df   : > { %v4483_v41 = vsub.f32 %v4466_v22, %v1852_v38  ;;  %2143 = vmatpush.bf16.msra.mxu2 %v3506_v37  ;;  %v3755_v38 = vld [vmem:[%s4061_s7 + $0x24] sm:$0xf]  ;;  %v4560_v37 = vld [vmem:[%s4067_s26] sm:$0xf] }
 0x5e0   : > { %v1932_v44 = vperm.slane %v4560_v37, 0 }
 0x5e1   : > { %v1856_v42 = vmul.f32 %v4483_v41, %v4483_v41  ;;  %2134 = vmatpush.bf16.msra.mxu1 %v3422_v52 }
 0x5e3   : > { %1859 = vadd.xlane.f32.xlu2 %v1856_v42  ;;  %v3415_v42 = vld [vmem:[%s4061_s7 + $0x30] sm:$0xf0]  ;;  %2144 = vmatpush.bf16.msra.mxu2 %v3490_v53  ;;  %s5011_s7 = sld [smem:[#allocation14_spill]] (!%p3659_p5) }
 0x5e4   : > { %v3418_v45 = vor.u32 %v3755_v38, %v3415_v42  ;;  %v1934_v38 = vperm.slane %v4560_v37, 2 }
 0x5e5   : > { %2135 = vmatpush.bf16.msra.mxu1 %v3406_v2 }
 0x5e6   : > { %2120 = vmatpush.bf16.msrb.mxu3 %v3418_v45  ;;  %v1933_v45 = vperm.slane %v4560_v37, 1 }
 0x5e7   : > { %2145 = vmatpush.bf16.msra.mxu2 %v3474_v3 }
 0x5ea   : > { %2121 = vmatpush.bf16.msrb.mxu3 %v3402_v62 }
 0x5eb   : > { %2146 = vmatpush.bf16.msra.mxu2 %v3458_v7 }
 0x5ef   : > { %2147 = vmatpush.bf16.msra.mxu2 %v3442_v12 }
 0x5f3   : > { %2148 = vmatpush.bf16.msra.mxu2 %v3426_v19 }
 0x5f7   : > { %2149 = vmatpush.bf16.msra.mxu2 %v3410_v35 }
 0x64e   : > { %v1858_v51 = vpop.xlane.xlu1 %1857 }
 0x64f   : > { %v1861_v61 = vmul.f32 %v1858_v51, %v4271_v36 }
 0x651   : > { %v1863_v4 = vadd.f32 1e-05, %v1861_v61 }
 0x653   : > { %3870 = vrsqrt.f32 %v1863_v4  ;;  %vm1871_vm9 = vweird.f32 %v1863_v4 }
 0x656   : > { %v1860_v8 = vpop.xlane.xlu2 %1859 }
 0x657   : > { %v1862_v11 = vmul.f32 %v1860_v8, %v4271_v36 }
 0x659   : > { %v3871_v13 = vpop.eup %3870  ;;  %v1864_v14 = vadd.f32 1e-05, %v1862_v11 }
 0x65a   : > { %v1866_v17 = vmul.f32 %v3871_v13, %v1863_v4  ;;  %vm1872_vm8 = vweird.f32 %v3871_v13 }
 0x65b   : > { %3872 = vrsqrt.f32 %v1864_v14  ;;  %vm1873_vm10 = vmor %vm1871_vm9, %vm1872_vm8  ;;  %vm1881_vm12 = vweird.f32 %v1864_v14 }
 0x65c   : > { %v1867_v18 = vmul.f32 %v3871_v13, %v1866_v17 }
 0x65e   : > { %v1868_v50 = vmul.f32 0.5, %v1867_v18 }
 0x660   : > { %v1869_v40 = vsub.f32 1.5, %v1868_v50 }
 0x661   : > { %v3873_v54 = vpop.eup %3872 }
 0x662   : > { %v1870_v55 = vmul.f32 %v3871_v13, %v1869_v40  ;;  %v1876_v60 = vmul.f32 %v3873_v54, %v1864_v14  ;;  %vm1882_vm11 = vweird.f32 %v3873_v54 }
 0x663   : > { %vm1883_vm13 = vmor %vm1881_vm12, %vm1882_vm11 }
 0x664   : > { %v1877_v59 = vmul.f32 %v3873_v54, %v1876_v60  ;;  %v1874_v21 = vsel %vm1873_vm10, %v3871_v13, %v1870_v55 }
 0x665   : > { %v1885_v25 = vmul.f32 %v1874_v21, %v4477_v33 }
 0x666   : > { %v1878_v23 = vmul.f32 0.5, %v1877_v59 }
 0x667   : > { %v1890_v28 = vmul.f32 %v3829_v26, %v1885_v25 }
 0x668   : > { %v1879_v24 = vsub.f32 1.5, %v1878_v23 }
 0x669   : > { %v1895_v33 = vadd.f32 %v3830_v31, %v1890_v28 }
 0x66a   : > { %v1880_v27 = vmul.f32 %v3873_v54, %v1879_v24 }
 0x66c   : > { %v1884_v43 = vsel %vm1883_vm13, %v3873_v54, %v1880_v27 }
 0x66d   : > { %v1886_v30 = vmul.f32 %v1884_v43, %v4483_v41 }
 0x66f   : > { %v1891_v29 = vmul.f32 %v3829_v26, %v1886_v30 }
 0x671   : > { %v1896_v32 = vadd.f32 %v3830_v31, %v1891_v29 }
 0x673   : > { %v1929_v34 = vpack.c.bf16 %v1896_v32, %v1895_v33 }
 0x675   : > { %2108 = vmatmul.bf16.vlgmr.msrb.gmra.mxu2 %v1929_v34  ;;  %2122 = vmatmul.bf16.vlgmr.msrb.gmra.mxu3 %v1929_v34 }
 0x676   : > { %2136 = vmatmul.bf16.vlgmr.msra.gmra.mxu1 %v1929_v34 }
 0x685   : > { %2150 = vmatmul.bf16.vlgmr.msra.gmra.mxu2 %v1929_v34 }
 0x6f3   : > { %v2137_v42 = vpop.f32.mrf.mxu1 }
 0x6f4   : > { %v4563_v41 = vadd.f32 %v2137_v42, %v1934_v38 }
 0x6f6   : > { %v4568_v46 = vmul.f32 0.70710677, %v4563_v41 }
 0x6f8   : > { %v2252_v47 = vmul.f32 %v4568_v46, %v4568_v46  ;;  %v2109_v48 = vpop.f32.mrf.mxu2  ;;  %v2123_v51 = vpop.f32.mrf.mxu3 }
 0x6f9   : > { %v4574_v52 = vadd.f32 %v2109_v48, %v1932_v44  ;;  %v4578_v53 = vadd.f32 %v2123_v51, %v1933_v45 }
 0x6fa   : > { %v4580_v56 = vmin.f32 %v2252_v47, 16.0 }
 0x6fb   : > { %v4583_v57 = vmul.f32 0.70710677, %v4574_v52  ;;  %v4586_v58 = vmul.f32 0.70710677, %v4578_v53  ;;  %v2139_v61 = vpop.f32.mrf.mxu1 }
 0x6fc   : > { %v2254_v62 = vmul.f32 2.1237322e-06, %v4580_v56  ;;  %v2265_v63 = vmul.f32 3.8918573e-05, %v4580_v56  ;;  %v4590_v0 = vadd.f32 %v2139_v61, %v1934_v38 }
 0x6fd   : > { %v2172_v1 = vmul.f32 %v4583_v57, %v4583_v57  ;;  %v2212_v2 = vmul.f32 %v4586_v58, %v4586_v58 }
 0x6fe   : > { %v2255_v3 = vadd.f32 0.00028619796, %v2254_v62  ;;  %v2266_v4 = vadd.f32 0.001143296, %v2265_v63  ;;  %v4601_v7 = vmul.f32 0.70710677, %v4590_v0 }
 0x6ff   : > { %v4596_v5 = vmin.f32 %v2172_v1, 16.0  ;;  %v4598_v6 = vmin.f32 %v2212_v2, 16.0 }
 0x700   : > { %v2256_v8 = vmul.f32 %v2255_v3, %v4580_v56  ;;  %v2267_v9 = vmul.f32 %v2266_v4, %v4580_v56  ;;  %v2412_v13 = vmul.f32 %v4601_v7, %v4601_v7  ;;  %v2111_v2 = vpop.f32.mrf.mxu2 }
 0x701   : > { %v2174_v10 = vmul.f32 2.1237322e-06, %v4596_v5  ;;  %v2185_v11 = vmul.f32 3.8918573e-05, %v4596_v5  ;;  %v2214_v12 = vmul.f32 2.1237322e-06, %v4598_v6 }
 0x702   : > { %v2268_v14 = vadd.f32 0.014752088, %v2267_v9  ;;  %v2225_v15 = vmul.f32 3.8918573e-05, %v4598_v6  ;;  %v2257_v16 = vadd.f32 0.0036580483, %v2256_v8 }
 0x703   : > { %v2175_v17 = vadd.f32 0.00028619796, %v2174_v10  ;;  %v2186_v18 = vadd.f32 0.001143296, %v2185_v11  ;;  %v4612_v49 = vmin.f32 %v2412_v13, 16.0 }
 0x704   : > { %v2269_v19 = vmul.f32 %v2268_v14, %v4580_v56  ;;  %v2226_v39 = vadd.f32 0.001143296, %v2225_v15  ;;  %v2215_v35 = vadd.f32 0.00028619796, %v2214_v12  ;;  %v2258_v59 = vmul.f32 %v2257_v16, %v4580_v56  ;;  %v2125_v14 = vpop.f32.mrf.mxu3 }
 0x705   : > { %v2176_v50 = vmul.f32 %v2175_v17, %v4596_v5  ;;  %v2187_v40 = vmul.f32 %v2186_v18, %v4596_v5  ;;  %v2414_v60 = vmul.f32 2.1237322e-06, %v4612_v49  ;;  %v2425_v30 = vmul.f32 3.8918573e-05, %v4612_v49 }
 0x706   : > { %v2270_v54 = vadd.f32 0.112945676, %v2269_v19  ;;  %v2227_v55 = vmul.f32 %v2226_v39, %v4598_v6  ;;  %v2216_v43 = vmul.f32 %v2215_v35, %v4598_v6  ;;  %v2259_v33 = vadd.f32 0.05243302, %v2258_v59 }
 0x707   : > { %v2188_v21 = vadd.f32 0.014752088, %v2187_v40  ;;  %v2415_v25 = vadd.f32 0.00028619796, %v2414_v60  ;;  %v2177_v26 = vadd.f32 0.0036580483, %v2176_v50  ;;  %v4639_v12 = vadd.f32 %v2111_v2, %v1932_v44 }
 0x708   : > { %v2271_v23 = vmul.f32 %v2270_v54, %v4580_v56  ;;  %v2228_v24 = vadd.f32 0.014752088, %v2227_v55  ;;  %v2217_v48 = vadd.f32 0.0036580483, %v2216_v43  ;;  %v2426_v51 = vadd.f32 0.001143296, %v2425_v30 }
 0x709   : > { %v2189_v27 = vmul.f32 %v2188_v21, %v4596_v5  ;;  %v2416_v29 = vmul.f32 %v2415_v25, %v4612_v49  ;;  %v2178_v42 = vmul.f32 %v2177_v26, %v4596_v5  ;;  %v2260_v63 = vmul.f32 %v2259_v33, %v4580_v56  ;;  %v3806_v60 = vld [vmem:[%s4072_s4 + $0xb8] sm:$0xff] }
 0x70a   : > { %v2272_v28 = vadd.f32 0.4994258, %v2271_v23  ;;  %v2229_v31 = vmul.f32 %v2228_v24, %v4598_v6  ;;  %v2427_v4 = vmul.f32 %v2426_v51, %v4612_v49  ;;  %v2218_v10 = vmul.f32 %v2217_v48, %v4598_v6  ;;  %2796 = vmatpush.bf16.msrb.mxu1 %v3806_v60  ;;  %v3790_v48 = vld [vmem:[%s4072_s4 + $0x38] sm:$0xff] }
 0x70b   : > { %v2190_v32 = vadd.f32 0.112945676, %v2189_v27  ;;  %v2417_v62 = vadd.f32 0.0036580483, %v2416_v29  ;;  %v2179_v8 = vadd.f32 0.05243302, %v2178_v42  ;;  %v4651_v35 = vadd.f32 %v2125_v14, %v1933_v45  ;;  %2768 = vmatpush.bf16.msra.mxu3 %v3790_v48  ;;  %v2151_v14 = vpop.f32.mrf.mxu2 }
 0x70c   : > { %v2273_v34 = vmul.f32 %v2272_v28, %v4580_v56  ;;  %v2230_v38 = vadd.f32 0.112945676, %v2229_v31  ;;  %v2261_v13 = vadd.f32 0.18741608, %v2260_v63  ;;  %v2428_v16 = vadd.f32 0.014752088, %v2427_v4 }
 0x70d   : > { %v2191_v47 = vmul.f32 %v2190_v32, %v4596_v5  ;;  %v2418_v11 = vmul.f32 %v2417_v62, %v4612_v49  ;;  %v2180_v17 = vmul.f32 %v2179_v8, %v4596_v5  ;;  %v2219_v19 = vadd.f32 0.05243302, %v2218_v10  ;;  %v3798_v28 = vld [vmem:[%s4072_s4 + $0x78] sm:$0xff]  ;;  %v3805_v31 = vld [vmem:[%s4072_s4 + $0xb0] sm:$0xff] }
 0x70e   : > { %v4628_v61 = vadd.f32 1.0, %v2273_v34  ;;  %v2231_v3 = vmul.f32 %v2230_v38, %v4598_v6  ;;  %v4647_v40 = vmul.f32 0.70710677, %v4639_v12  ;;  %v2262_v44 = vmul.f32 %v2261_v13, %v4580_v56  ;;  %2782 = vmatpush.bf16.msra.mxu0 %v3798_v28  ;;  %2797 = vmatpush.bf16.msrb.mxu1 %v3805_v31  ;;  %v3802_v48 = vld [vmem:[%s4072_s4 + $0x98] sm:$0xff] }
 0x70f   : > { %v2192_v1 = vadd.f32 0.4994258, %v2191_v47  ;;  %v2419_v50 = vadd.f32 0.05243302, %v2418_v11  ;;  %v2429_v55 = vmul.f32 %v2428_v16, %v4612_v49  ;;  %v2181_v21 = vadd.f32 0.18741608, %v2180_v17 }
 0x710   : > { %3874 = vrcp.f32 %v4628_v61  ;;  %v2232_v15 = vadd.f32 0.4994258, %v2231_v3  ;;  %v2220_v23 = vmul.f32 %v2219_v19, %v4598_v6  ;;  %v2332_v56 = vmul.f32 %v4647_v40, %v4647_v40  ;;  %v3804_v3 = vld [vmem:[%s4072_s4 + $0xa8] sm:$0xff]  ;;  %v3789_v16 = vld [vmem:[%s4072_s4 + $0x30] sm:$0xff] }
 0x711   : > { %v2193_v9 = vmul.f32 %v2192_v1, %v4596_v5  ;;  %v2430_v24 = vadd.f32 0.112945676, %v2429_v55  ;;  %v2420_v45 = vmul.f32 %v2419_v50, %v4612_v49  ;;  %v4665_v25 = vmul.f32 0.70710677, %v4651_v35  ;;  %2769 = vmatpush.bf16.msra.mxu3 %v3789_v16  ;;  %v3803_v55 = vld [vmem:[%s4072_s4 + $0xa0] sm:$0xff] }
 0x712   : > { %v2233_v59 = vmul.f32 %v2232_v15, %v4598_v6  ;;  %v4668_v26 = vmul.f32 0.5, %v4563_v41  ;;  %v2263_v27 = vadd.f32 1.1283791, %v2262_v44  ;;  %v4674_v29 = vmul.f32 0.5, %v4574_v52  ;;  %v3797_v15 = vld [vmem:[%s4072_s4 + $0x70] sm:$0xff]  ;;  %2798 = vmatpush.bf16.msrb.mxu1 %v3804_v3 }
 0x713   : > { %v4642_v18 = vadd.f32 1.0, %v2193_v9  ;;  %v2431_v30 = vmul.f32 %v2430_v24, %v4612_v49  ;;  %v4678_v32 = vmin.f32 %v2332_v56, 16.0  ;;  %v2372_v34 = vmul.f32 %v4665_v25, %v4665_v25  ;;  %2783 = vmatpush.bf16.msra.mxu0 %v3797_v15  ;;  %v3796_v56 = vld [vmem:[%s4072_s4 + $0x68] sm:$0xff] }
 0x714   : > { %v4676_v33 = vadd.f32 1.0, %v2233_v59  ;;  %v2182_v41 = vmul.f32 %v2181_v21, %v4596_v5  ;;  %v2221_v38 = vadd.f32 0.18741608, %v2220_v23  ;;  %v4684_v42 = vmul.f32 0.5, %v4590_v0  ;;  %v3786_v23 = vld [vmem:[%s4072_s4 + $0x18] sm:$0xff] }
 0x715   : > { %3876 = vrcp.f32 %v4642_v18  ;;  %v2432_v47 = vadd.f32 0.4994258, %v2431_v30  ;;  %v2421_v52 = vadd.f32 0.18741608, %v2420_v45  ;;  %v2334_v51 = vmul.f32 2.1237322e-06, %v4678_v32 }
 0x716   : > { %v4644_v39 = vpop.eup %3874  ;;  %v2345_v62 = vmul.f32 3.8918573e-05, %v4678_v32  ;;  %v4692_v1 = vmul.f32 %v2263_v27, %v4568_v46  ;;  %v4696_v2 = vmin.f32 %v2372_v34, 16.0  ;;  %v2284_v4 = vand.u32 2147483647, %v4628_v61  ;;  %2799 = vmatpush.bf16.msrb.mxu1 %v3803_v55  ;;  %v3788_v27 = vld [vmem:[%s4072_s4 + $0x28] sm:$0xff] }
 0x717   : > { %v2276_v54 = vmul.f32 %v4644_v39, %v4628_v61  ;;  %v2433_v0 = vmul.f32 %v2432_v47, %v4612_v49  ;;  %3878 = vrcp.f32 %v4676_v33  ;;  %v2335_v8 = vadd.f32 0.00028619796, %v2334_v51  ;;  %2784 = vmatpush.bf16.msra.mxu0 %v3796_v56  ;;  %2770 = vmatpush.bf16.msra.mxu3 %v3788_v27  ;;  %v3794_v27 = vld [vmem:[%s4072_s4 + $0x58] sm:$0xff] }
 0x718   : > { %v2346_v9 = vadd.f32 0.001143296, %v2345_v62  ;;  %v2286_v10 = vand.u32 2147483648, %v4628_v61  ;;  %v2183_v11 = vadd.f32 1.1283791, %v2182_v41  ;;  %v2222_v46 = vmul.f32 %v2221_v38, %v4598_v6  ;;  %v3814_v30 = vld [vmem:[%s4072_s4 + $0xf8] sm:$0xff] }
 0x719   : > { %v2277_v43 = vsub.f32 1.0, %v2276_v54  ;;  %v4703_v13 = vadd.f32 1.0, %v2433_v0  ;;  %v2422_v19 = vmul.f32 %v2421_v52, %v4612_v49  ;;  %v2336_v50 = vmul.f32 %v2335_v8, %v4678_v32  ;;  %v3787_v8 = vld [vmem:[%s4072_s4 + $0x20] sm:$0xff]  ;;  %2810 = vmatpush.bf16.msrb.mxu2 %v3814_v30 }
 0x71a   : > { %v2347_v44 = vmul.f32 %v2346_v9, %v4678_v32  ;;  %vm2281_vm14 = vweird.f32 %v4644_v39  ;;  %v2374_v6 = vmul.f32 2.1237322e-06, %v4696_v2  ;;  %v2206_v60 = vand.u32 2147483648, %v4642_v18  ;;  %2800 = vmatpush.bf16.msrb.mxu1 %v3802_v48 }
 0x71b   : > { %v4689_v63 = vpop.eup %3876  ;;  %v2278_v5 = vmul.f32 %v4644_v39, %v2277_v43  ;;  %3880 = vrcp.f32 %v4703_v13  ;;  %v2337_v49 = vadd.f32 0.0036580483, %v2336_v50  ;;  %v2385_v59 = vmul.f32 3.8918573e-05, %v4696_v2  ;;  %2771 = vmatpush.bf16.msra.mxu3 %v3787_v8  ;;  %v3801_v50 = vld [vmem:[%s4072_s4 + $0x90] sm:$0xff] }
 0x71c   : > { %v2196_v17 = vmul.f32 %v4689_v63, %v4642_v18  ;;  %v1935_v21 = vperm.slane %v4560_v37, 3  ;;  %vm2280_vm15 = vweird.f32 %v4628_v61  ;;  %vm4721_vm0 = vcmp.eq.f32.partialorder %v2284_v4, 8.507059e+37  ;;  %v3795_v4 = vld [vmem:[%s4072_s4 + $0x60] sm:$0xff] }
 0x71d   : > { %v2279_v54 = vadd.f32 %v4644_v39, %v2278_v5  ;;  %v2287_v24 = vor.u32 1.1754944e-38, %v2286_v10  ;;  %v2348_v45 = vadd.f32 0.014752088, %v2347_v44  ;;  %v4727_v43 = vpop.eup %3878  ;;  %vm4731_vm1 = vmor %vm2280_vm15, %vm2281_vm14  ;;  %v4736_v37 = vmul.f32 %v2183_v11, %v4583_v57  ;;  %2785 = vmatpush.bf16.msra.mxu0 %v3795_v4 }
 0x71e   : > { %v2197_v61 = vsub.f32 1.0, %v2196_v17  ;;  %v4738_v28 = vadd.f32 1.1283791, %v2222_v46  ;;  %v2423_v31 = vadd.f32 1.1283791, %v2422_v19  ;;  %v2338_v41 = vmul.f32 %v2337_v49, %v4678_v32  ;;  %v2153_v19 = vpop.f32.mrf.mxu2  ;;  %2801 = vmatpush.bf16.msrb.mxu1 %v3801_v50 }
 0x71f   : > { %v2283_v34 = vsel %vm4731_vm1, %v4644_v39, %v2279_v54  ;;  %v2349_v38 = vmul.f32 %v2348_v45, %v4678_v32  ;;  %v2375_v47 = vadd.f32 0.00028619796, %v2374_v6  ;;  %v2204_v57 = vand.u32 2147483647, %v4642_v18  ;;  %2772 = vmatpush.bf16.msra.mxu3 %v3786_v23  ;;  %v3792_v23 = vld [vmem:[%s4072_s4 + $0x48] sm:$0xff] }
 0x720   : > { %v4747_v52 = vor.u32 1.1754944e-38, %v2206_v60  ;;  %v2386_v51 = vadd.f32 0.001143296, %v2385_v59  ;;  %v4749_v62 = vadd.f32 %v2151_v14, %v1935_v21  ;;  %vm2201_vm2 = vweird.f32 %v4689_v63 }
 0x721   : > { %v4751_v5 = vpop.eup %3880  ;;  %v4756_v39 = vmul.f32 %v4727_v43, %v4676_v33  ;;  %v2350_v0 = vadd.f32 0.112945676, %v2349_v38  ;;  %v2376_v3 = vmul.f32 %v2375_v47, %v4696_v2  ;;  %v2288_v9 = vsel %vm4721_vm0, %v2287_v24, %v2283_v34  ;;  %v3800_v38 = vld [vmem:[%s4072_s4 + $0x88] sm:$0xff]  ;;  %2786 = vmatpush.bf16.msra.mxu0 %v3794_v27 }
 0x722   : > { %v2198_v10 = vmul.f32 %v4689_v63, %v2197_v61  ;;  %v2424_v11 = vmul.f32 %v2423_v31, %v4601_v7  ;;  %v2436_v46 = vmul.f32 %v4751_v5, %v4703_v13  ;;  %vm2200_vm3 = vweird.f32 %v4642_v18  ;;  %2802 = vmatpush.bf16.msrb.mxu1 %v3800_v38 }
 0x723   : > { %v2444_v14 = vand.u32 2147483647, %v4703_v13  ;;  %v2339_v15 = vadd.f32 0.05243302, %v2338_v41  ;;  %v2351_v16 = vmul.f32 %v2350_v0, %v4678_v32  ;;  %v2387_v17 = vmul.f32 %v2386_v51, %v4696_v2  ;;  %vm4820_vm9 = vmor %vm2200_vm3, %vm2201_vm2 }
 0x724   : > { %v2437_v7 = vsub.f32 1.0, %v2436_v46  ;;  %v2446_v44 = vand.u32 2147483648, %v4703_v13  ;;  %v2377_v54 = vadd.f32 0.0036580483, %v2376_v3  ;;  %v4774_v6 = vmul.f32 0.70710677, %v4749_v62 }
 0x725   : > { %v2289_v55 = vmul.f32 %v2288_v9, %v4692_v1  ;;  %v2237_v60 = vsub.f32 1.0, %v4756_v39  ;;  %v2352_v49 = vadd.f32 0.4994258, %v2351_v16  ;;  %v2388_v59 = vadd.f32 0.014752088, %v2387_v17  ;;  %v3793_v9 = vld [vmem:[%s4072_s4 + $0x50] sm:$0xff] }
 0x726   : > { %v2438_v24 = vmul.f32 %v4751_v5, %v2437_v7  ;;  %vm2441_vm4 = vweird.f32 %v4751_v5  ;;  %v2292_v45 = vmul.f32 %v4774_v6, %v4774_v6  ;;  %v4783_v56 = vadd.f32 %v2153_v19, %v1935_v21  ;;  %v3799_v17 = vld [vmem:[%s4072_s4 + $0x80] sm:$0xff]  ;;  %2787 = vmatpush.bf16.msra.mxu0 %v3793_v9 }
 0x727   : > { %v2199_v1 = vadd.f32 %v4689_v63, %v2198_v10  ;;  %vm4788_vm5 = vcmp.eq.f32.partialorder %v2204_v57, 8.507059e+37  ;;  %v2340_v31 = vmul.f32 %v2339_v15, %v4678_v32  ;;  %v2353_v34 = vmul.f32 %v2352_v49, %v4678_v32  ;;  %v3813_v10 = vld [vmem:[%s4072_s4 + $0xf0] sm:$0xff]  ;;  %2803 = vmatpush.bf16.msrb.mxu1 %v3799_v17 }
 0x728   : > { %v2389_v41 = vmul.f32 %v2388_v59, %v4696_v2  ;;  %v2439_v21 = vadd.f32 %v4751_v5, %v2438_v24  ;;  %vm2440_vm6 = vweird.f32 %v4703_v13  ;;  %v2447_v47 = vor.u32 1.1754944e-38, %v2446_v44  ;;  %v3785_v13 = vld [vmem:[%s4072_s4 + $0x10] sm:$0xff]  ;;  %2811 = vmatpush.bf16.msrb.mxu2 %v3813_v10  ;;  %v3812_v24 = vld [vmem:[%s4072_s4 + $0xe8] sm:$0xff] }
 0x729   : > { %v4798_v48 = vmin.f32 %v2292_v45, 16.0  ;;  %vm2442_vm7 = vmor %vm2440_vm6, %vm2441_vm4  ;;  %v4802_v57 = vadd.f32 1.0, %v2353_v34  ;;  %v2378_v51 = vmul.f32 %v2377_v54, %v4696_v2  ;;  %v4806_v0 = vmul.f32 0.70710677, %v4783_v56  ;;  %2773 = vmatpush.bf16.msra.mxu3 %v3785_v13 }
 0x72a   : > { %v2390_v39 = vadd.f32 0.112945676, %v2389_v41  ;;  %v3525_v3 = vclamps-f32 %v2289_v55, 1.0  ;;  %v2443_v4 = vsel %vm2442_vm7, %v4751_v5, %v2439_v21  ;;  %vm2445_vm8 = vcmp.eq.f32.partialorder %v2444_v14, 8.507059e+37  ;;  %2788 = vmatpush.bf16.msra.mxu0 %v3792_v23 }
 0x72b   : > { %v2305_v8 = vmul.f32 3.8918573e-05, %v4798_v48  ;;  %v2244_v46 = vand.u32 2147483647, %v4676_v33  ;;  %v2448_v15 = vsel %vm2445_vm8, %v2447_v47, %v2443_v4  ;;  %v2341_v16 = vadd.f32 0.18741608, %v2340_v31 }
 0x72c   : > { %3882 = vrcp.f32 %v4802_v57  ;;  %v2238_v14 = vmul.f32 %v4727_v43, %v2237_v60  ;;  %v2449_v19 = vmul.f32 %v2448_v15, %v2424_v11  ;;  %v2391_v50 = vmul.f32 %v2390_v39, %v4696_v2  ;;  %v3784_v60 = vld [vmem:[%s4072_s4 + $0x8] sm:$0xff]  ;;  %2812 = vmatpush.bf16.msrb.mxu2 %v3812_v24  ;;  %v3791_v4 = vld [vmem:[%s4072_s4 + $0x40] sm:$0xff] }
 0x72d   : > { %v2294_v7 = vmul.f32 2.1237322e-06, %v4798_v48  ;;  %v2203_v44 = vsel %vm4820_vm9, %v4689_v63, %v2199_v1  ;;  %v2379_v18 = vadd.f32 0.05243302, %v2378_v51  ;;  %v2306_v54 = vadd.f32 0.001143296, %v2305_v8  ;;  %2774 = vmatpush.bf16.msra.mxu3 %v3784_v60 }
 0x72e   : > { %v2452_v55 = vmul.f32 %v4806_v0, %v4806_v0  ;;  %v2494_v49 = vadd.f32 1.0, %v3525_v3  ;;  %vm2240_vm10 = vweird.f32 %v4676_v33  ;;  %v3529_v11 = vclamps-f32 %v2449_v19, 1.0  ;;  %v3783_v3 = vld [vmem:[%s4072_s4] sm:$0xff]  ;;  %2789 = vmatpush.bf16.msra.mxu0 %v3791_v4  ;;  %v3810_v19 = vld [vmem:[%s4072_s4 + $0xd8] sm:$0xff] }
 0x72f   : > { %v2392_v59 = vadd.f32 0.4994258, %v2391_v50  ;;  %v2246_v45 = vand.u32 2147483648, %v4676_v33  ;;  %v2342_v27 = vmul.f32 %v2341_v16, %v4678_v32  ;;  %v2307_v63 = vmul.f32 %v2306_v54, %v4798_v48  ;;  %v3811_v8 = vld [vmem:[%s4072_s4 + $0xe0] sm:$0xff] }
 0x730   : > { %v4839_v30 = vmin.f32 %v2452_v55, 16.0  ;;  %v2208_v1 = vsel %vm4788_vm5, %v4747_v52, %v2203_v44  ;;  %v2498_v31 = vadd.f32 1.0, %v3529_v11  ;;  %v2295_v41 = vadd.f32 0.00028619796, %v2294_v7  ;;  %2813 = vmatpush.bf16.msrb.mxu2 %v3811_v8  ;;  %v3808_v52 = vld [vmem:[%s4072_s4 + $0xc8] sm:$0xff] }
 0x731   : > { %v2393_v34 = vmul.f32 %v2392_v59, %v4696_v2  ;;  %v2239_v32 = vadd.f32 %v4727_v43, %v2238_v14  ;;  %vm2241_vm11 = vweird.f32 %v4727_v43  ;;  %v2308_v21 = vadd.f32 0.014752088, %v2307_v63  ;;  %2775 = vmatpush.bf16.msra.mxu3 %v3783_v3 }
 0x732   : > { %v3883_v38 = vpop.eup %3882  ;;  %v2454_v47 = vmul.f32 2.1237322e-06, %v4839_v30  ;;  %v2502_v61 = vmul.f32 %v2494_v49, %v4668_v26  ;;  %vm4849_vm12 = vcmp.eq.f32.partialorder %v2244_v46, 8.507059e+37  ;;  %v2506_v51 = vmul.f32 %v2498_v31, %v4684_v42  ;;  %vm4873_vm13 = vmor %vm2240_vm10, %vm2241_vm11 }
 0x733   : > { %v2356_v39 = vmul.f32 %v3883_v38, %v4802_v57  ;;  %v2380_v13 = vmul.f32 %v2379_v18, %v4696_v2  ;;  %v2209_v9 = vmul.f32 %v2208_v1, %v4736_v37  ;;  %v2343_v10 = vadd.f32 1.1283791, %v2342_v27  ;;  %v3809_v1 = vld [vmem:[%s4072_s4 + $0xd0] sm:$0xff] }
 0x734   : > { %v4860_v15 = vadd.f32 1.0, %v2393_v34  ;;  %v2309_v26 = vmul.f32 %v2308_v21, %v4798_v48  ;;  %v2574_v46 = vpack.c.bf16 %v2506_v51, %v2502_v61  ;;  %v2296_v17 = vmul.f32 %v2295_v41, %v4798_v48  ;;  %2814 = vmatpush.bf16.msrb.mxu2 %v3810_v19 }
 0x735   : > { %v2357_v16 = vsub.f32 1.0, %v2356_v39  ;;  %v2465_v42 = vmul.f32 3.8918573e-05, %v4839_v30  ;;  %v2364_v5 = vand.u32 2147483647, %v4802_v57  ;;  %v2366_v14 = vand.u32 2147483648, %v4802_v57 }
 0x736   : > { %3884 = vrcp.f32 %v4860_v15  ;;  %v2455_v37 = vadd.f32 0.00028619796, %v2454_v47  ;;  %vm2361_vm14 = vweird.f32 %v3883_v38  ;;  %v2381_v44 = vadd.f32 0.18741608, %v2380_v13  ;;  %2804 = vmatmul.bf16.vlgmr.msrb.gmra.mxu1 %v2574_v46 }
 0x737   : > { %v2358_v7 = vmul.f32 %v3883_v38, %v2357_v16  ;;  %v2310_v18 = vadd.f32 0.112945676, %v2309_v26  ;;  %v3523_v54 = vclamps-f32 %v2209_v9, 1.0  ;;  %v2243_v55 = vsel %vm4873_vm13, %v4727_v43, %v2239_v32 }
 0x738   : > { %v2247_v60 = vor.u32 1.1754944e-38, %v2246_v45  ;;  %v2466_v49 = vadd.f32 0.001143296, %v2465_v42  ;;  %vm2360_vm15 = vweird.f32 %v4802_v57  ;;  %v2297_v33 = vadd.f32 0.0036580483, %v2296_v17  ;;  %2815 = vmatpush.bf16.msrb.mxu2 %v3809_v1 }
 0x739   : > { %v2359_v11 = vadd.f32 %v3883_v38, %v2358_v7  ;;  %v2311_v59 = vmul.f32 %v2310_v18, %v4798_v48  ;;  %v2344_v23 = vmul.f32 %v2343_v10, %v4647_v40  ;;  %vm2362_vm0 = vmor %vm2360_vm15, %vm2361_vm14  ;;  %v2367_v24 = vor.u32 1.1754944e-38, %v2366_v14 }
 0x73a   : > { %v2456_v27 = vmul.f32 %v2455_v37, %v4839_v30  ;;  %v2467_v63 = vmul.f32 %v2466_v49, %v4839_v30  ;;  %vm2365_vm1 = vcmp.eq.f32.partialorder %v2364_v5, 8.507059e+37  ;;  %v2382_v43 = vmul.f32 %v2381_v44, %v4696_v2  ;;  %v3807_v5 = vld [vmem:[%s4072_s4 + $0xc0] sm:$0xff] }
 0x73b   : > { %v2363_v31 = vsel %vm2362_vm0, %v3883_v38, %v2359_v11  ;;  %v2312_v45 = vadd.f32 0.4994258, %v2311_v59  ;;  %v2248_v34 = vsel %vm4849_vm12, %v2247_v60, %v2243_v55  ;;  %v2160_v40 = vmul.f32 0.5, %v4639_v12 }
 0x73c   : > { %v3885_v57 = vpop.eup %3884  ;;  %v2368_v41 = vsel %vm2365_vm1, %v2367_v24, %v2363_v31  ;;  %v2468_v32 = vadd.f32 0.014752088, %v2467_v63  ;;  %v2224_v21 = vmul.f32 %v4738_v28, %v4586_v58  ;;  %v2298_v38 = vmul.f32 %v2297_v33, %v4798_v48  ;;  %2816 = vmatpush.bf16.msrb.mxu2 %v3808_v52 }
 0x73d   : > { %v2369_v47 = vmul.f32 %v2368_v41, %v2344_v23  ;;  %v2396_v61 = vmul.f32 %v3885_v57, %v4860_v15  ;;  %v2492_v51 = vadd.f32 1.0, %v3523_v54  ;;  %v2313_v2 = vmul.f32 %v2312_v45, %v4798_v48 }
 0x73e   : > { %v2457_v39 = vadd.f32 0.0036580483, %v2456_v27  ;;  %v2469_v13 = vmul.f32 %v2468_v32, %v4839_v30  ;;  %v2249_v3 = vmul.f32 %v2248_v34, %v2224_v21  ;;  %v2383_v4 = vadd.f32 1.1283791, %v2382_v43 }
 0x73f   : > { %v3527_v12 = vclamps-f32 %v2369_v47, 1.0  ;;  %v2397_v8 = vsub.f32 1.0, %v2396_v61  ;;  %v2404_v58 = vand.u32 2147483647, %v4860_v15  ;;  %v2406_v28 = vand.u32 2147483648, %v4860_v15 }
 0x740   : > { %v2314_v9 = vadd.f32 1.0, %v2313_v2  ;;  %v2470_v10 = vadd.f32 0.112945676, %v2469_v13  ;;  %vm2401_vm2 = vweird.f32 %v3885_v57  ;;  %v2299_v16 = vadd.f32 0.05243302, %v2298_v38  ;;  %2817 = vmatpush.bf16.msrb.mxu2 %v3807_v5 }
 0x741   : > { %v2496_v26 = vadd.f32 1.0, %v3527_v12  ;;  %v2398_v46 = vmul.f32 %v3885_v57, %v2397_v8  ;;  %v2500_v17 = vmul.f32 %v2492_v51, %v4674_v29  ;;  %v2458_v42 = vmul.f32 %v2457_v39, %v4839_v30 }
 0x742   : > { %3886 = vrcp.f32 %v2314_v9  ;;  %vm2400_vm3 = vweird.f32 %v4860_v15  ;;  %v2471_v19 = vmul.f32 %v2470_v10, %v4839_v30  ;;  %v3524_v50 = vclamps-f32 %v2249_v3, 1.0 }
 0x743   : > { %v2504_v14 = vmul.f32 %v2496_v26, %v2160_v40  ;;  %v2399_v37 = vadd.f32 %v3885_v57, %v2398_v46  ;;  %v2384_v7 = vmul.f32 %v2383_v4, %v4665_v25  ;;  %vm2402_vm4 = vmor %vm2400_vm3, %vm2401_vm2  ;;  %vm2405_vm5 = vcmp.eq.f32.partialorder %v2404_v58, 8.507059e+37 }
 0x744   : > { %v2407_v44 = vor.u32 1.1754944e-38, %v2406_v28  ;;  %v2300_v29 = vmul.f32 %v2299_v16, %v4798_v48  ;;  %v2472_v55 = vadd.f32 0.4994258, %v2471_v19  ;;  %v2459_v49 = vadd.f32 0.05243302, %v2458_v42 }
 0x745   : > { %v2572_v18 = vpack.c.bf16 %v2504_v14, %v2500_v17  ;;  %v2403_v54 = vsel %vm2402_vm4, %v3885_v57, %v2399_v37  ;;  %v2493_v59 = vadd.f32 1.0, %v3524_v50  ;;  %v2157_v27 = vmul.f32 0.5, %v4578_v53 }
 0x746   : > { %v2408_v60 = vsel %vm2405_vm5, %v2407_v44, %v2403_v54  ;;  %v2473_v33 = vmul.f32 %v2472_v55, %v4839_v30  ;;  %v2301_v24 = vadd.f32 0.18741608, %v2300_v29  ;;  %v2460_v63 = vmul.f32 %v2459_v49, %v4839_v30 }
 0x747   : > { %v2409_v11 = vmul.f32 %v2408_v60, %v2384_v7  ;;  %2776 = vmatmul.bf16.vlgmr.msra.gmra.mxu3 %v2572_v18  ;;  %v2161_v31 = vmul.f32 0.5, %v4651_v35  ;;  %v2501_v57 = vmul.f32 %v2493_v59, %v2157_v27  ;;  %v2326_v32 = vand.u32 2147483648, %v2314_v9 }
 0x748   : > { %v3887_v15 = vpop.eup %3886  ;;  %v2474_v1 = vadd.f32 1.0, %v2473_v33  ;;  %v2302_v40 = vmul.f32 %v2301_v24, %v4798_v48  ;;  %v2461_v21 = vadd.f32 0.18741608, %v2460_v63  ;;  %vm2320_vm7 = vweird.f32 %v2314_v9 }
 0x749   : > { %v3528_v23 = vclamps-f32 %v2409_v11, 1.0  ;;  %v2316_v25 = vmul.f32 %v3887_v15, %v2314_v9  ;;  %vm2321_vm6 = vweird.f32 %v3887_v15  ;;  %v2324_v53 = vand.u32 2147483647, %v2314_v9 }
 0x74a   : > { %3888 = vrcp.f32 %v2474_v1  ;;  %vm2322_vm8 = vmor %vm2320_vm7, %vm2321_vm6  ;;  %v2303_v38 = vadd.f32 1.1283791, %v2302_v40  ;;  %v2327_v2 = vor.u32 1.1754944e-38, %v2326_v32  ;;  %v2462_v39 = vmul.f32 %v2461_v21, %v4839_v30 }
 0x74b   : > { %v2497_v43 = vadd.f32 1.0, %v3528_v23  ;;  %v2317_v45 = vsub.f32 1.0, %v2316_v25  ;;  %vm2325_vm9 = vcmp.eq.f32.partialorder %v2324_v53, 8.507059e+37  ;;  %v2486_v4 = vand.u32 2147483648, %v2474_v1 }
 0x74c   : > { %v2304_v48 = vmul.f32 %v2303_v38, %v4774_v6  ;;  %v2463_v12 = vadd.f32 1.1283791, %v2462_v39  ;;  %v2484_v28 = vand.u32 2147483647, %v2474_v1  ;;  %vm2480_vm11 = vweird.f32 %v2474_v1 }
 0x74d   : > { %v2505_v34 = vmul.f32 %v2497_v43, %v2161_v31  ;;  %v2318_v41 = vmul.f32 %v3887_v15, %v2317_v45  ;;  %v2487_v10 = vor.u32 1.1754944e-38, %v2486_v4  ;;  %v2159_v5 = vmul.f32 0.5, %v4749_v62  ;;  %v3831_v62 = vld [vmem:[%s5008_s0] ss:$0 sm:$0xff] }
 0x74e   : > { %v2464_v46 = vmul.f32 %v2463_v12, %v4806_v0  ;;  %vm2485_vm13 = vcmp.eq.f32.partialorder %v2484_v28, 8.507059e+37  ;;  %v2163_v14 = vmul.f32 0.5, %v4783_v56 }
 0x74f   : > { %v2573_v47 = vpack.c.bf16 %v2505_v34, %v2501_v57  ;;  %v2319_v61 = vadd.f32 %v3887_v15, %v2318_v41 }
 0x750   : > { %v3889_v35 = vpop.eup %3888 }
 0x751   : > { %v2323_v51 = vsel %vm2322_vm8, %v3887_v15, %v2319_v61  ;;  %2790 = vmatmul.bf16.vlgmr.msra.gmra.mxu0 %v2573_v47  ;;  %v2476_v13 = vmul.f32 %v3889_v35, %v2474_v1  ;;  %vm2481_vm10 = vweird.f32 %v3889_v35 }
 0x752   : > { %v2328_v52 = vsel %vm2325_vm9, %v2327_v2, %v2323_v51  ;;  %vm2482_vm12 = vmor %vm2480_vm11, %vm2481_vm10 }
 0x753   : > { %v2477_v3 = vsub.f32 1.0, %v2476_v13  ;;  %v2329_v8 = vmul.f32 %v2328_v52, %v2304_v48 }
 0x755   : > { %v2478_v58 = vmul.f32 %v3889_v35, %v2477_v3  ;;  %v3526_v26 = vclamps-f32 %v2329_v8, 1.0 }
 0x757   : > { %v2479_v9 = vadd.f32 %v3889_v35, %v2478_v58  ;;  %v2495_v42 = vadd.f32 1.0, %v3526_v26 }
 0x759   : > { %v2483_v30 = vsel %vm2482_vm12, %v3889_v35, %v2479_v9  ;;  %v2503_v19 = vmul.f32 %v2495_v42, %v2159_v5 }
 0x75a   : > { %v2488_v16 = vsel %vm2485_vm13, %v2487_v10, %v2483_v30 }
 0x75b   : > { %v2489_v17 = vmul.f32 %v2488_v16, %v2464_v46 }
 0x75d   : > { %v3530_v6 = vclamps-f32 %v2489_v17, 1.0 }
 0x75f   : > { %v2499_v37 = vadd.f32 1.0, %v3530_v6 }
 0x761   : > { %v2507_v50 = vmul.f32 %v2499_v37, %v2163_v14 }
 0x763   : > { %v2575_v7 = vpack.c.bf16 %v2507_v50, %v2503_v19 }
 0x765   : > { %2818 = vmatmul.bf16.vlgmr.msrb.gmra.mxu2 %v2575_v7 }
 0x7b3   : > { %v2805_v0 = vpop.f32.mrf.mxu1 }
 0x7bb   : > { %v2807_v59 = vpop.f32.mrf.mxu1 }
 0x7ca   : > { %v2777_v44 = vpop.f32.mrf.mxu3 }
 0x7ce   : > { %v2791_v18 = vpop.f32.mrf.mxu0 }
 0x7cf   : > { %v2792_v54 = vadd.f32 %v2791_v18, %v2777_v44 }
 0x7d1   : > { %v2806_v29 = vadd.f32 %v2805_v0, %v2792_v54 }
 0x7d2   : > { %v2779_v55 = vpop.f32.mrf.mxu3 }
 0x7d6   : > { %v2793_v11 = vpop.f32.mrf.mxu0 }
 0x7d7   : > { %v2794_v56 = vadd.f32 %v2793_v11, %v2779_v55 }
 0x7d9   : > { %v2808_v23 = vadd.f32 %v2807_v59, %v2794_v56 }
 0x7e8   : > { %v2819_v60 = vpop.f32.mrf.mxu2 }
 0x7e9   : > { %v2820_v49 = vadd.f32 %v2819_v60, %v2806_v29 }
 0x7eb   : > { %v2824_v33 = vadd.f32 %v2820_v49, %v4462_v20 }
 0x7ed   : > { %v2830_v15 = vadd.f32 %v3831_v62, %v2824_v33 }
 0x7ef   : > { %2832 = vst [vmem:[#allocation2] sm:$0xff] %v2830_v15 }
 0x7f0   : > { %v2821_v24 = vpop.f32.mrf.mxu2 }
 0x7f1   : > { %v2822_v25 = vadd.f32 %v2821_v24, %v2808_v23 }
 0x7f3   : > { %v2825_v27 = vadd.f32 %v2822_v25, %v4466_v22  ;;  %2837 = sbr.rel (%p3659_p5) target bundleno = 2315 (0x90b), region = 104 }
 0x7f5   : > { %v2831_v63 = vadd.f32 %v3831_v62, %v2825_v27 }
 0x7f7   : > { %2833 = vst [vmem:[#allocation2 + $0x8] sm:$0xff] %v2831_v63 }
 0x7f8   : > { %2840 = vadd.xlane.f32.xlu0 %v2830_v15  ;;  %v3890_v48 = vld [vmem:[%s5009_s27] ss:$0 sm:$0xff] }
 0x7f9   : > { %v3891_v4 = vld [vmem:[%s5010_s29] ss:$0 sm:$0xff] }
 0x800   : > { %2842 = vadd.xlane.f32.xlu0 %v2831_v63 }
 0x86b   : > { %v2841_v1 = vpop.xlane.xlu0 %2840 }
 0x86c   : > { %v2844_v31 = vmul.f32 %v2841_v1, %v4271_v36 }
 0x86e   : > { %v2846_v43 = vsub.f32 %v2830_v15, %v2844_v31 }
 0x870   : > { %v2848_v20 = vmul.f32 %v2846_v43, %v2846_v43 }
 0x872   : > { %2850 = vadd.xlane.f32.xlu1 %v2848_v20 }
 0x873   : > { %v2843_v45 = vpop.xlane.xlu0 %2842 }
 0x874   : > { %v2845_v57 = vmul.f32 %v2843_v45, %v4271_v36 }
 0x876   : > { %v2847_v34 = vsub.f32 %v2831_v63, %v2845_v57 }
 0x878   : > { %v2849_v40 = vmul.f32 %v2847_v34, %v2847_v34 }
 0x87a   : > { %2852 = vadd.xlane.f32.xlu1 %v2849_v40 }
 0x8e5   : > { %v2851_v22 = vpop.xlane.xlu1 %2850 }
 0x8e6   : > { %v2854_v41 = vmul.f32 %v2851_v22, %v4271_v36 }
 0x8e8   : > { %v2856_v32 = vadd.f32 1e-05, %v2854_v41 }
 0x8ea   : > { %3892 = vrsqrt.f32 %v2856_v32  ;;  %vm2864_vm15 = vweird.f32 %v2856_v32 }
 0x8ed   : > { %v2853_v21 = vpop.xlane.xlu1 %2852 }
 0x8ee   : > { %v2855_v47 = vmul.f32 %v2853_v21, %v4271_v36 }
 0x8f0   : > { %v3893_v61 = vpop.eup %3892  ;;  %v2857_v53 = vadd.f32 1e-05, %v2855_v47 }
 0x8f1   : > { %v2859_v38 = vmul.f32 %v3893_v61, %v2856_v32  ;;  %vm2865_vm14 = vweird.f32 %v3893_v61 }
 0x8f2   : > { %3894 = vrsqrt.f32 %v2857_v53  ;;  %vm2866_vm0 = vmor %vm2864_vm15, %vm2865_vm14  ;;  %vm2874_vm2 = vweird.f32 %v2857_v53 }
 0x8f3   : > { %v2860_v51 = vmul.f32 %v3893_v61, %v2859_v38 }
 0x8f5   : > { %v2861_v35 = vmul.f32 0.5, %v2860_v51 }
 0x8f7   : > { %v2862_v2 = vsub.f32 1.5, %v2861_v35 }
 0x8f8   : > { %v3895_v39 = vpop.eup %3894 }
 0x8f9   : > { %v2863_v13 = vmul.f32 %v3893_v61, %v2862_v2  ;;  %v2869_v52 = vmul.f32 %v3895_v39, %v2857_v53  ;;  %vm2875_vm1 = vweird.f32 %v3895_v39 }
 0x8fa   : > { %vm2876_vm3 = vmor %vm2874_vm2, %vm2875_vm1 }
 0x8fb   : > { %v2867_v3 = vsel %vm2866_vm0, %v3893_v61, %v2863_v13  ;;  %v2870_v12 = vmul.f32 %v3895_v39, %v2869_v52 }
 0x8fc   : > { %v2878_v36 = vmul.f32 %v2867_v3, %v2846_v43 }
 0x8fd   : > { %v2871_v8 = vmul.f32 0.5, %v2870_v12 }
 0x8fe   : > { %v2883_v58 = vmul.f32 %v3890_v48, %v2878_v36 }
 0x8ff   : > { %v2872_v28 = vsub.f32 1.5, %v2871_v8 }
 0x900   : > { %v2888_v9 = vadd.f32 %v3891_v4, %v2883_v58 }
 0x901   : > { %v2873_v10 = vmul.f32 %v3895_v39, %v2872_v28 }
 0x902   : > { %2890 = vst [vmem:[%s5011_s7] sm:$0xff] %v2888_v9 }
 0x903   : > { %v2877_v26 = vsel %vm2876_vm3, %v3895_v39, %v2873_v10 }
 0x904   : > { %v2879_v46 = vmul.f32 %v2877_v26, %v2847_v34 }
 0x906   : > { %v2884_v30 = vmul.f32 %v3890_v48, %v2879_v46 }
 0x908   : > { %v2889_v16 = vadd.f32 %v3891_v4, %v2884_v30 }
 0x90a   : > { %2891 = vst [vmem:[%s5011_s7 + $0x8] sm:$0xff] %v2889_v16 }
 0x90b PF: > { %s5012_s28 = sld [smem:[#allocation3_spill]] }
 0x911   : > { %s29_s0 = sadd.s32 1, %s5012_s28  }
 0x912   : > { %p26_p6 = scmp.ge.s32.totalorder %s29_s0, 4  }
 0x914   :  { %28 = sbr.rel (!%p26_p6) target bundleno = 12 (0xc), region = 163 }

</bundles_post_ra>
